<compile_context>
chip_gen: v5e
topology: v5e:2x2
jax: 0.10.0
libtpu: 0.0.40
codegen_flags: <defaults>
</compile_context>

<pallas_src>
import jax
import jax.numpy as jnp
from jax.experimental import pallas as pl
from jax.experimental.pallas import tpu as pltpu


def timecnn_kernel(x_ref, w1_ref, b1_ref, w2_ref, b2_ref, fcw_ref, fcb_ref, o_ref):
    # x_ref: (TB, S*F) f32 -- rows = batch tile, cols ordered s*F + f.
    x = x_ref[...].astype(jnp.bfloat16)

    # conv1 (kernel=3, pad=1) folded into a block-Toeplitz matmul:
    # (TB, S*F) @ (S*F, H*F) -> (TB, H*F), cols ordered h*F + f.
    h1 = jnp.dot(x, w1_ref[...], preferred_element_type=jnp.float32)
    h1 = jnp.maximum(h1 + b1_ref[...], 0.0)          # f32 bias + relu (v5e-safe)

    # conv2: (TB, H*F) @ (H*F, H*F).
    h2 = jnp.dot(h1.astype(jnp.bfloat16), w2_ref[...],
                 preferred_element_type=jnp.float32)
    h2 = jnp.maximum(h2 + b2_ref[...], 0.0)

    # fc: h2 cols are already in PyTorch's flatten order (h*F + f).
    y = jnp.dot(h2.astype(jnp.bfloat16), fcw_ref[...],
                preferred_element_type=jnp.float32)  # (TB, O)
    o_ref[...] = y + fcb_ref[...]


def _expand_conv_weight(w, F):
    """(C_out, C_in, 3) conv1d weight (pad=1) -> (C_out*F, C_in*F) block-Toeplitz."""
    C_out, C_in, K = w.shape
    fo = jnp.arange(F)[:, None]                 # output position
    fi = jnp.arange(F)[None, :]                 # input position
    k = fi - fo + 1                             # tap index (padding = 1)
    valid = ((k >= 0) & (k < K)).astype(w.dtype)
    kc = jnp.clip(k, 0, K - 1)
    wt = jnp.transpose(w, (0, 2, 1))            # (C_out, K, C_in)
    wg = wt[:, kc, :] * valid[None, :, :, None]  # (C_out, F, F, C_in)
    # rows = h*F + fo, cols = c*F + fi
    return jnp.transpose(wg, (0, 1, 3, 2)).reshape(C_out * F, C_in * F)


def prepare_params(params, feature_size):
    """One-time (init-time) expansion / transpose / cast of the raw parameters."""
    w1, b1, w2, b2, fcw, fcb = params
    F = feature_size
    H = w1.shape[0]
    O = fcw.shape[0]
    w1e = jnp.transpose(_expand_conv_weight(w1, F)).astype(jnp.bfloat16)   # (S*F, H*F)
    w2e = jnp.transpose(_expand_conv_weight(w2, F)).astype(jnp.bfloat16)   # (H*F, H*F)
    b1e = jnp.repeat(b1, F).reshape(1, H * F).astype(jnp.float32)
    b2e = jnp.repeat(b2, F).reshape(1, H * F).astype(jnp.float32)
    fcw_t = jnp.transpose(fcw).astype(jnp.bfloat16)                        # (H*F, O)
    fcb_r = fcb.reshape(1, O).astype(jnp.float32)
    return (w1e, b1e, w2e, b2e, fcw_t, fcb_r)


def _pick_tb(B):
    """Batch-tile (sublane) size per TPU generation."""
    try:
        kind = jax.devices()[0].device_kind.lower()
    except Exception:
        kind = ""
    if B % 256 == 0:
        if "v6" in kind:                    # 1 TC/chip, 256-wide MXU: bigger tiles
            return 256
        if "v7" in kind and B >= 512:       # keep grid a multiple of 2 (2 TCs)
            return 256
    return 128                              # v5e MXU width / safe default


def timecnn_forward(x, prepared_params, *, tb=None):
    """x: (B, S, F) f32.  prepared_params: output of prepare_params()."""
    w1e, b1e, w2e, b2e, fcw_t, fcb_r = prepared_params
    B, S, F = x.shape
    SF = S * F
    HF = w2e.shape[0]
    O = fcw_t.shape[1]
    assert w1e.shape == (SF, HF)

    if tb is None:
        tb = _pick_tb(B)
    Bp = ((B + tb - 1) // tb) * tb
    n_tiles = Bp // tb

    x2 = x.reshape(B, SF)                     # free reshape, cols = s*F + f
    if Bp != B:
        # Padded rows compute relu(bias) garbage; discarded by the [:B] slice.
        x2 = jnp.pad(x2, ((0, Bp - B), (0, 0)))

    flops = 2 * Bp * (SF * HF + HF * HF + HF * O)
    bytes_accessed = (Bp * SF * 4                       # x (f32)
                      + (SF * HF + HF * HF + HF * O) * 2  # bf16 weights
                      + (2 * HF + O) * 4                  # f32 biases
                      + Bp * O * 4)                       # output

    out = pl.pallas_call(
        timecnn_kernel,
        out_shape=jax.ShapeDtypeStruct((Bp, O), jnp.float32),
        grid_spec=pltpu.PrefetchScalarGridSpec(
            num_scalar_prefetch=0,
            grid=(n_tiles,),
            in_specs=[
                pl.BlockSpec((tb, SF), lambda b: (b, 0)),    # x batch tile
                pl.BlockSpec((SF, HF), lambda b: (0, 0)),    # conv1 expanded (resident)
                pl.BlockSpec((1, HF), lambda b: (0, 0)),     # conv1 bias
                pl.BlockSpec((HF, HF), lambda b: (0, 0)),    # conv2 expanded (resident)
                pl.BlockSpec((1, HF), lambda b: (0, 0)),     # conv2 bias
                pl.BlockSpec((HF, O), lambda b: (0, 0)),     # fc weight (resident)
                pl.BlockSpec((1, O), lambda b: (0, 0)),      # fc bias
            ],
            out_specs=pl.BlockSpec((tb, O), lambda b: (b, 0)),
        ),
        compiler_params=pltpu.CompilerParams(
            dimension_semantics=("parallel",)),
        cost_estimate=pl.CostEstimate(
            flops=flops, transcendentals=0, bytes_accessed=bytes_accessed),
    )(x2, w1e, b1e, w2e, b2e, fcw_t, fcb_r)

    return out[:B]                                           # (B, O)


def init_params(key, feature_size, sequence_length, hidden_size, output_size):
    """Deterministic PyTorch-style (uniform +/- 1/sqrt(fan_in)) init."""
    ks = jax.random.split(key, 6)

    def u(k, shape, fan_in):
        bound = 1.0 / jnp.sqrt(jnp.float32(fan_in))
        return jax.random.uniform(k, shape, jnp.float32, -bound, bound)

    w1 = u(ks[0], (hidden_size, sequence_length, 3), sequence_length * 3)
    b1 = u(ks[1], (hidden_size,), sequence_length * 3)
    w2 = u(ks[2], (hidden_size, hidden_size, 3), hidden_size * 3)
    b2 = u(ks[3], (hidden_size,), hidden_size * 3)
    fcw = u(ks[4], (output_size, hidden_size * feature_size), hidden_size * feature_size)
    fcb = u(ks[5], (output_size,), hidden_size * feature_size)
    return (w1, b1, w2, b2, fcw, fcb)


def ref_forward(x, params):
    """Pure-JAX f32 reference matching the PyTorch forward exactly."""
    w1, b1, w2, b2, fcw, fcb = params

    def conv1d(inp, w, b):
        F = inp.shape[-1]
        xp = jnp.pad(inp, ((0, 0), (0, 0), (1, 1)))
        out = sum(jnp.einsum('oc,bcf->bof', w[:, :, k], xp[:, :, k:k + F])
                  for k in range(3))
        return out + b[None, :, None]

    h1 = jax.nn.relu(conv1d(x, w1, b1))
    h2 = jax.nn.relu(conv1d(h1, w2, b2))
    flat = h2.reshape(h2.shape[0], -1)
    return flat @ fcw.T + fcb[None, :]


if __name__ == "__main__":
    # Shapes consistent with the module; batch sized so the kernel produces
    # lane/sublane-dense 128- (or 256-)row tiles.
    B, feature_size, sequence_length, hidden_size, output_size = 256, 16, 8, 32, 4

    key = jax.random.PRNGKey(0)
    kx, kp = jax.random.split(key)
    x = jax.random.normal(kx, (B, sequence_length, feature_size), jnp.float32)
    params = init_params(kp, feature_size, sequence_length, hidden_size, output_size)

    # One-time parameter plumbing (hoisted out of the per-call path).
    prepared = jax.block_until_ready(prepare_params(params, feature_size))

    fwd = jax.jit(timecnn_forward)
    out = jax.block_until_ready(fwd(x, prepared))

    ref = ref_forward(x, params)
    assert out.shape == (B, output_size), out.shape
    # bf16 dot inputs with f32 accumulation -> compare at loosened tolerance.
    assert jnp.allclose(out, ref, atol=2e-2, rtol=2e-2), (
        float(jnp.max(jnp.abs(out - ref))))
    print("KERNEL_OK")
</pallas_src>

<mosaic_0001>
module attributes {stable_mosaic.version = 11 : i64} {
  func.func @timecnn_kernel(%arg0: i32, %arg1: memref<128x128xf32, #tpu.memory_space<vmem>>, %arg2: memref<128x512xbf16, #tpu.memory_space<vmem>>, %arg3: memref<1x512xf32, #tpu.memory_space<vmem>>, %arg4: memref<512x512xbf16, #tpu.memory_space<vmem>>, %arg5: memref<1x512xf32, #tpu.memory_space<vmem>>, %arg6: memref<512x4xbf16, #tpu.memory_space<vmem>>, %arg7: memref<1x4xf32, #tpu.memory_space<vmem>>, %arg8: memref<128x4xf32, #tpu.memory_space<vmem>>) attributes {dimension_semantics = [#tpu.dimension_semantics<parallel>], iteration_bounds = array<i64: 2>, scalar_prefetch = 0 : i64, scratch_operands = 0 : i64, tpu.core_type = #tpu.core_type<tc>, window_params = [{transform_indices = @transform_0, window_bounds = array<i64: 128, 128>}, {pipeline_mode = #tpu.pipeline_mode<synchronous>, transform_indices = @transform_1, window_bounds = array<i64: 128, 512>}, {pipeline_mode = #tpu.pipeline_mode<synchronous>, transform_indices = @transform_2, window_bounds = array<i64: 1, 512>}, {pipeline_mode = #tpu.pipeline_mode<synchronous>, transform_indices = @transform_3, window_bounds = array<i64: 512, 512>}, {pipeline_mode = #tpu.pipeline_mode<synchronous>, transform_indices = @transform_4, window_bounds = array<i64: 1, 512>}, {pipeline_mode = #tpu.pipeline_mode<synchronous>, transform_indices = @transform_5, window_bounds = array<i64: 512, 4>}, {pipeline_mode = #tpu.pipeline_mode<synchronous>, transform_indices = @transform_6, window_bounds = array<i64: 1, 4>}, {transform_indices = @transform_7, window_bounds = array<i64: 128, 4>}]} {
    %c0 = arith.constant 0 : index
    %c0_0 = arith.constant 0 : index
    %0 = vector.load %arg1[%c0, %c0_0] : memref<128x128xf32, #tpu.memory_space<vmem>>, vector<128x128xf32>
    %1 = arith.truncf %0 : vector<128x128xf32> to vector<128x128xbf16>
    %c0_1 = arith.constant 0 : index
    %c0_2 = arith.constant 0 : index
    %2 = vector.load %arg2[%c0_1, %c0_2] : memref<128x512xbf16, #tpu.memory_space<vmem>>, vector<128x512xbf16>
    %cst = arith.constant dense<0.000000e+00> : vector<128x512xf32>
    %3 = tpu.matmul %1, %2, %cst {dimension_numbers = #tpu.dot_dimension_numbers<[1], [0], [0], [1], [0, 0, 1, 1], [], []>} : vector<128x128xbf16>, vector<128x512xbf16>, vector<128x512xf32> -> vector<128x512xf32>
    %c0_3 = arith.constant 0 : index
    %c0_4 = arith.constant 0 : index
    %4 = vector.load %arg3[%c0_3, %c0_4] : memref<1x512xf32, #tpu.memory_space<vmem>>, vector<1x512xf32>
    %5 = vector.broadcast %4 : vector<1x512xf32> to vector<128x512xf32>
    %6 = arith.addf %3, %5 : vector<128x512xf32>
    %cst_5 = arith.constant 0.000000e+00 : f32
    %7 = vector.broadcast %cst_5 : f32 to vector<128x512xf32>
    %8 = arith.maximumf %6, %7 : vector<128x512xf32>
    %9 = arith.truncf %8 : vector<128x512xf32> to vector<128x512xbf16>
    %c0_6 = arith.constant 0 : index
    %c0_7 = arith.constant 0 : index
    %10 = vector.load %arg4[%c0_6, %c0_7] : memref<512x512xbf16, #tpu.memory_space<vmem>>, vector<512x512xbf16>
    %cst_8 = arith.constant dense<0.000000e+00> : vector<128x512xf32>
    %11 = tpu.matmul %9, %10, %cst_8 {dimension_numbers = #tpu.dot_dimension_numbers<[1], [0], [0], [1], [0, 0, 1, 1], [], []>} : vector<128x512xbf16>, vector<512x512xbf16>, vector<128x512xf32> -> vector<128x512xf32>
    %c0_9 = arith.constant 0 : index
    %c0_10 = arith.constant 0 : index
    %12 = vector.load %arg5[%c0_9, %c0_10] : memref<1x512xf32, #tpu.memory_space<vmem>>, vector<1x512xf32>
    %13 = vector.broadcast %12 : vector<1x512xf32> to vector<128x512xf32>
    %14 = arith.addf %11, %13 : vector<128x512xf32>
    %cst_11 = arith.constant 0.000000e+00 : f32
    %15 = vector.broadcast %cst_11 : f32 to vector<128x512xf32>
    %16 = arith.maximumf %14, %15 : vector<128x512xf32>
    %17 = arith.truncf %16 : vector<128x512xf32> to vector<128x512xbf16>
    %c0_12 = arith.constant 0 : index
    %c0_13 = arith.constant 0 : index
    %18 = vector.load %arg6[%c0_12, %c0_13] : memref<512x4xbf16, #tpu.memory_space<vmem>>, vector<512x4xbf16>
    %cst_14 = arith.constant dense<0.000000e+00> : vector<128x4xf32>
    %19 = tpu.matmul %17, %18, %cst_14 {dimension_numbers = #tpu.dot_dimension_numbers<[1], [0], [0], [1], [0, 0, 1, 1], [], []>} : vector<128x512xbf16>, vector<512x4xbf16>, vector<128x4xf32> -> vector<128x4xf32>
    %c0_15 = arith.constant 0 : index
    %c0_16 = arith.constant 0 : index
    %20 = vector.load %arg7[%c0_15, %c0_16] : memref<1x4xf32, #tpu.memory_space<vmem>>, vector<1x4xf32>
    %21 = vector.broadcast %20 : vector<1x4xf32> to vector<128x4xf32>
    %22 = arith.addf %19, %21 : vector<128x4xf32>
    %c0_17 = arith.constant 0 : index
    %c0_18 = arith.constant 0 : index
    %23 = vector.load %arg8[%c0_17, %c0_18] : memref<128x4xf32, #tpu.memory_space<vmem>>, vector<128x4xf32>
    tpu.vector_store %arg8[%c0_17, %c0_18], %22 {strides = array<i32>} : memref<128x4xf32, #tpu.memory_space<vmem>>, vector<128x4xf32>,
    return
  }
  func.func @transform_0(%arg0: i32) -> (i32, i32) {
    %c0_i32 = arith.constant 0 : i32
    %c0_i32_0 = arith.constant 0 : i32
    return %arg0, %c0_i32 : i32, i32
  }
  func.func @transform_1(%arg0: i32) -> (i32, i32) {
    %c0_i32 = arith.constant 0 : i32
    %c0_i32_0 = arith.constant 0 : i32
    %c0_i32_1 = arith.constant 0 : i32
    return %c0_i32, %c0_i32_0 : i32, i32
  }
  func.func @transform_2(%arg0: i32) -> (i32, i32) {
    %c0_i32 = arith.constant 0 : i32
    %c0_i32_0 = arith.constant 0 : i32
    %c0_i32_1 = arith.constant 0 : i32
    return %c0_i32, %c0_i32_0 : i32, i32
  }
  func.func @transform_3(%arg0: i32) -> (i32, i32) {
    %c0_i32 = arith.constant 0 : i32
    %c0_i32_0 = arith.constant 0 : i32
    %c0_i32_1 = arith.constant 0 : i32
    return %c0_i32, %c0_i32_0 : i32, i32
  }
  func.func @transform_4(%arg0: i32) -> (i32, i32) {
    %c0_i32 = arith.constant 0 : i32
    %c0_i32_0 = arith.constant 0 : i32
    %c0_i32_1 = arith.constant 0 : i32
    return %c0_i32, %c0_i32_0 : i32, i32
  }
  func.func @transform_5(%arg0: i32) -> (i32, i32) {
    %c0_i32 = arith.constant 0 : i32
    %c0_i32_0 = arith.constant 0 : i32
    %c0_i32_1 = arith.constant 0 : i32
    return %c0_i32, %c0_i32_0 : i32, i32
  }
  func.func @transform_6(%arg0: i32) -> (i32, i32) {
    %c0_i32 = arith.constant 0 : i32
    %c0_i32_0 = arith.constant 0 : i32
    %c0_i32_1 = arith.constant 0 : i32
    return %c0_i32, %c0_i32_0 : i32, i32
  }
  func.func @transform_7(%arg0: i32) -> (i32, i32) {
    %c0_i32 = arith.constant 0 : i32
    %c0_i32_0 = arith.constant 0 : i32
    return %arg0, %c0_i32 : i32, i32
  }
}

</mosaic_0001>

<bundles_post_ra>
// kernel: timecnn_forward.1
= control target key start
LH: loop header
LB: loop body
LE: loop exit
PB: predicated region body
PF: predicated region fallthrough
CT: control target
= control target key end

     0   :  { %12 = vsyncpa [#allocation3], 0  ;;  %s4097_s24 = smov 0   ;;  %s4916_s0 = inlined_call_operand.vmem [shape: f32[256,128], index: 0, kind: input, shape index: {}]   ;;  %s4917_s1 = inlined_call_operand.vmem [shape: bf16[128,512], index: 1, kind: input, shape index: {}]   ;;  %s4918_s2 = inlined_call_operand.vmem [shape: f32[1,512], index: 2, kind: input, shape index: {}]   ;;  %s4919_s3 = inlined_call_operand.hbm [shape: bf16[512,512], index: 3, kind: input, shape index: {}]   ;;  %s4920_s4 = inlined_call_operand.vmem [shape: f32[1,512], index: 4, kind: input, shape index: {}]   ;;  %s4921_s5 = inlined_call_operand.vmem [shape: bf16[512,4], index: 5, kind: input, shape index: {}]   ;;  %s4922_s6 = inlined_call_operand.vmem [shape: f32[1,4], index: 6, kind: input, shape index: {}]   ;;  %s4923_s7 = inlined_call_operand.vmem [shape: f32[256,4], index: 7, kind: output, shape index: {}]  }
   0x1 LB: > { %s218_s27 = sshll.u32 %s4919_s3, 4  ;;  %s3016_s28 = sadd.s32 4294967295, %s4052_s24   ;;  %s4052_s24 = sphi %s4097_s24, %s18_s24   ;;  %s219_s27 = int_to_ptr.hbm [resolvable:$true] %s218_s27 }
   0x2   : > { %p3018_p0 = scmp.ge.s32.totalorder %s4052_s24, 1  ;;  %p201_p1 = scmp.lt.s32.totalorder %s4052_s24, 3 }
   0x3   : > { %p3997_p2 = scmp.eq.s32.totalorder %s3016_s28, 0  ;;  %s4054_s29 = smov [#allocation2]  }
   0x4   : > { %p202_p3 = pnand %p3018_p0, %p201_p1  ;;  %s220_s30 = sshll.u32 %s4054_s29, 4  ;;  %s221_s30 = int_to_ptr.vmem [resolvable:$true] %s220_s30 }
   0x5   : > { %s4055_s8 = smov 256   ;;  %s4056_s9 = smov 16  }
   0x6   : > { %p3993_p4 = pneg %p202_p3  ;;  %254 = sbr.rel (%p202_p3) target bundleno = 981 (0x3d5), region = 48 }
   0x8   : > { %p3994_p5 = pnand %p3997_p2, %p3993_p4 }
   0xa   : > { %3996 = dma.hbm_to_vmem [thread:$0]  (!%p3994_p5), %s219_s27, 16384, %s221_s30, [#allocation3], %s4055_s8, %s4055_s8, %s4056_s9  }
   0xb   : > { %4047 = dma.done.wait (%p3997_p2), [#allocation3], 16384  }
   0xc   : > { %4049 = vsyncadd (%p3997_p2), [#allocation3], 4294950912  ;;  %s4108_s10 = sshll.u32 %s3016_s28, 4  ;;  %v3141_v0 = vld [vmem:[%s4917_s1 + $0xe0] sm:$0xf]  ;;  %vm2931_vm0 = vcmask 31744  }
   0xd   : > { %v3827_v1 = vld [vmem:[%s4917_s1 + $0xec] sm:$0xf0]  ;;  %v3825_v2 = vld [vmem:[%s4917_s1 + $0xe4] sm:$0xf]  ;;  %v3143_v4 = vld [vmem:[%s4917_s1 + $0xf0] sm:$0xf0] }
   0xe   : > { %v3142_v3 = vor.u32 %v3827_v1, %v3141_v0  ;;  %v3149_v5 = vld [vmem:[%s4917_s1 + $0xe8] sm:$0xf]  ;;  %v3828_v6 = vld [vmem:[%s4917_s1 + $0xf4] sm:$0xf0]  ;;  %v3146_v7 = vor.u32 %v3825_v2, %v3143_v4  ;;  %v3826_v9 = vld [vmem:[%s4917_s1 + $0xec] sm:$0xf] }
   0xf   : > { %v3150_v8 = vor.u32 %v3828_v6, %v3149_v5  ;;  %v3151_v10 = vld [vmem:[%s4917_s1 + $0xf8] sm:$0xf0]  ;;  %v3125_v11 = vld [vmem:[%s4917_s1 + $0xc0] sm:$0xf]  ;;  %v3823_v13 = vld [vmem:[%s4917_s1 + $0xcc] sm:$0xf0] }
  0x10   : > { %525 = vmatpush.bf16.msra.mxu0 %v3142_v3  ;;  %v3154_v12 = vor.u32 %v3826_v9, %v3151_v10  ;;  %v3821_v14 = vld [vmem:[%s4917_s1 + $0xc4] sm:$0xf]  ;;  %v3127_v15 = vld [vmem:[%s4917_s1 + $0xd0] sm:$0xf0]  ;;  %574 = vmatpush.bf16.msra.mxu1 %v3146_v7  ;;  %v3126_v16 = vor.u32 %v3823_v13, %v3125_v11  ;;  %v3133_v18 = vld [vmem:[%s4917_s1 + $0xc8] sm:$0xf] }
  0x11   : > { %623 = vmatpush.bf16.msra.mxu2 %v3150_v8  ;;  %v3130_v17 = vor.u32 %v3821_v14, %v3127_v15  ;;  %v3824_v19 = vld [vmem:[%s4917_s1 + $0xd4] sm:$0xf0]  ;;  %v3822_v20 = vld [vmem:[%s4917_s1 + $0xcc] sm:$0xf]  ;;  %v3135_v22 = vld [vmem:[%s4917_s1 + $0xd8] sm:$0xf0] }
  0x12   : > { %672 = vmatpush.bf16.msra.mxu3 %v3154_v12  ;;  %v3134_v21 = vor.u32 %v3824_v19, %v3133_v18  ;;  %v3109_v23 = vld [vmem:[%s4917_s1 + $0xa0] sm:$0xf]  ;;  %v3819_v24 = vld [vmem:[%s4917_s1 + $0xac] sm:$0xf0]  ;;  %v3138_v25 = vor.u32 %v3822_v20, %v3135_v22  ;;  %v3817_v26 = vld [vmem:[%s4917_s1 + $0xa4] sm:$0xf] }
  0x13   : > { %v3111_v27 = vld [vmem:[%s4917_s1 + $0xb0] sm:$0xf0]  ;;  %v3117_v28 = vld [vmem:[%s4917_s1 + $0xa8] sm:$0xf]  ;;  %v3110_v29 = vor.u32 %v3819_v24, %v3109_v23  ;;  %v3820_v30 = vld [vmem:[%s4917_s1 + $0xb4] sm:$0xf0] }
  0x14   : > { %526 = vmatpush.bf16.msra.mxu0 %v3126_v16  ;;  %v3818_v31 = vld [vmem:[%s4917_s1 + $0xac] sm:$0xf]  ;;  %v3119_v32 = vld [vmem:[%s4917_s1 + $0xb8] sm:$0xf0]  ;;  %575 = vmatpush.bf16.msra.mxu1 %v3130_v17  ;;  %v3114_v33 = vor.u32 %v3817_v26, %v3111_v27  ;;  %v3118_v34 = vor.u32 %v3820_v30, %v3117_v28  ;;  %v3093_v35 = vld [vmem:[%s4917_s1 + $0x80] sm:$0xf] }
  0x15   : > { %624 = vmatpush.bf16.msra.mxu2 %v3134_v21  ;;  %v3815_v36 = vld [vmem:[%s4917_s1 + $0x8c] sm:$0xf0]  ;;  %v3813_v37 = vld [vmem:[%s4917_s1 + $0x84] sm:$0xf]  ;;  %v3122_v38 = vor.u32 %v3818_v31, %v3119_v32  ;;  %v3095_v39 = vld [vmem:[%s4917_s1 + $0x90] sm:$0xf0] }
  0x16   : > { %673 = vmatpush.bf16.msra.mxu3 %v3138_v25  ;;  %v3101_v40 = vld [vmem:[%s4917_s1 + $0x88] sm:$0xf]  ;;  %v3816_v41 = vld [vmem:[%s4917_s1 + $0x94] sm:$0xf0]  ;;  %v3814_v42 = vld [vmem:[%s4917_s1 + $0x8c] sm:$0xf]  ;;  %v3094_v44 = vor.u32 %v3815_v36, %v3093_v35  ;;  %v3098_v45 = vor.u32 %v3813_v37, %v3095_v39 }
  0x17   : > { %v3103_v43 = vld [vmem:[%s4917_s1 + $0x98] sm:$0xf0]  ;;  %p288_p6 = scmp.lt.s32.totalorder %s4108_s10, 31  ;;  %v3102_v46 = vor.u32 %v3816_v41, %v3101_v40  ;;  %v3077_v47 = vld [vmem:[%s4917_s1 + $0x60] sm:$0xf] }
  0x18   : > { %527 = vmatpush.bf16.msra.mxu0 %v3110_v29  ;;  %576 = vmatpush.bf16.msra.mxu1 %v3114_v33  ;;  %v3811_v48 = vld [vmem:[%s4917_s1 + $0x6c] sm:$0xf0]  ;;  %v3809_v49 = vld [vmem:[%s4917_s1 + $0x64] sm:$0xf]  ;;  %v3106_v50 = vor.u32 %v3814_v42, %v3103_v43  ;;  %v3079_v51 = vld [vmem:[%s4917_s1 + $0x70] sm:$0xf0] }
  0x19   : > { %625 = vmatpush.bf16.msra.mxu2 %v3118_v34  ;;  %v3085_v52 = vld [vmem:[%s4917_s1 + $0x68] sm:$0xf]  ;;  %v3812_v53 = vld [vmem:[%s4917_s1 + $0x74] sm:$0xf0]  ;;  %v3810_v54 = vld [vmem:[%s4917_s1 + $0x6c] sm:$0xf]  ;;  %v3078_v56 = vor.u32 %v3811_v48, %v3077_v47  ;;  %v3082_v57 = vor.u32 %v3809_v49, %v3079_v51 }
  0x1a   : > { %674 = vmatpush.bf16.msra.mxu3 %v3122_v38  ;;  %v3087_v55 = vld [vmem:[%s4917_s1 + $0x78] sm:$0xf0]  ;;  %s4933_s10 = smov (!%p288_p6, %s4108_s10), 31  ;;  %v3086_v58 = vor.u32 %v3812_v53, %v3085_v52  ;;  %v3061_v59 = vld [vmem:[%s4917_s1 + $0x40] sm:$0xf] }
  0x1b   : > { %v3807_v60 = vld [vmem:[%s4917_s1 + $0x4c] sm:$0xf0]  ;;  %v3805_v61 = vld [vmem:[%s4917_s1 + $0x44] sm:$0xf]  ;;  %v3090_v62 = vor.u32 %v3810_v54, %v3087_v55  ;;  %v3063_v63 = vld [vmem:[%s4917_s1 + $0x50] sm:$0xf0] }
  0x1c   : > { %528 = vmatpush.bf16.msra.mxu0 %v3094_v44  ;;  %577 = vmatpush.bf16.msra.mxu1 %v3098_v45  ;;  %v3069_v0 = vld [vmem:[%s4917_s1 + $0x48] sm:$0xf]  ;;  %v3808_v1 = vld [vmem:[%s4917_s1 + $0x54] sm:$0xf0]  ;;  %v3806_v2 = vld [vmem:[%s4917_s1 + $0x4c] sm:$0xf]  ;;  %v3062_v4 = vor.u32 %v3807_v60, %v3061_v59  ;;  %v3066_v5 = vor.u32 %v3805_v61, %v3063_v63 }
  0x1d   : > { %626 = vmatpush.bf16.msra.mxu2 %v3102_v46  ;;  %v3071_v3 = vld [vmem:[%s4917_s1 + $0x58] sm:$0xf0]  ;;  %s3024_s23 = sshll.u32 %s4933_s10, 3  ;;  %v3070_v6 = vor.u32 %v3808_v1, %v3069_v0  ;;  %v3045_v7 = vld [vmem:[%s4917_s1 + $0x20] sm:$0xf] }
  0x1e   : > { %675 = vmatpush.bf16.msra.mxu3 %v3106_v50  ;;  %v3803_v8 = vld [vmem:[%s4917_s1 + $0x2c] sm:$0xf0]  ;;  %v3801_v9 = vld [vmem:[%s4917_s1 + $0x24] sm:$0xf]  ;;  %v3074_v10 = vor.u32 %v3806_v2, %v3071_v3  ;;  %v3047_v11 = vld [vmem:[%s4917_s1 + $0x30] sm:$0xf0]  ;;  %s4290_s21 = scalar_lea.vmem %s4916_s0, %s3024_s23  ;;  %s4864_s12 = scalar_lea.vmem %s4923_s7, %s3024_s23 }
  0x1f   : > { %v3053_v12 = vld [vmem:[%s4917_s1 + $0x28] sm:$0xf]  ;;  %v3804_v13 = vld [vmem:[%s4917_s1 + $0x34] sm:$0xf0]  ;;  %v3802_v14 = vld [vmem:[%s4917_s1 + $0x2c] sm:$0xf]  ;;  %v3046_v16 = vor.u32 %v3803_v8, %v3045_v7  ;;  %v3050_v20 = vor.u32 %v3801_v9, %v3047_v11 }
  0x20   : > { %529 = vmatpush.bf16.msra.mxu0 %v3078_v56  ;;  %578 = vmatpush.bf16.msra.mxu1 %v3082_v57  ;;  %v3055_v15 = vld [vmem:[%s4917_s1 + $0x38] sm:$0xf0]  ;;  %v3029_v17 = vld [vmem:[%s4917_s1] sm:$0xf]  ;;  %v3799_v18 = vld [vmem:[%s4917_s1 + $0xc] sm:$0xf0]  ;;  %v3054_v21 = vor.u32 %v3804_v13, %v3053_v12 }
  0x21   : > { %627 = vmatpush.bf16.msra.mxu2 %v3086_v58  ;;  %v3797_v19 = vld [vmem:[%s4917_s1 + $0x4] sm:$0xf]  ;;  %v3031_v22 = vld [vmem:[%s4917_s1 + $0x10] sm:$0xf0]  ;;  %v3037_v23 = vld [vmem:[%s4917_s1 + $0x8] sm:$0xf]  ;;  %v3058_v25 = vor.u32 %v3802_v14, %v3055_v15  ;;  %v3030_v31 = vor.u32 %v3799_v18, %v3029_v17 }
  0x22   : > { %676 = vmatpush.bf16.msra.mxu3 %v3090_v62  ;;  %v3800_v24 = vld [vmem:[%s4917_s1 + $0x14] sm:$0xf0]  ;;  %v3798_v26 = vld [vmem:[%s4917_s1 + $0xc] sm:$0xf]  ;;  %v3039_v27 = vld [vmem:[%s4917_s1 + $0x18] sm:$0xf0]  ;;  %v3034_v35 = vor.u32 %v3797_v19, %v3031_v22 }
  0x23   : > { %v299_v28 = vld [vmem:[%s4290_s21] sm:$0xff]  ;;  %v3923_v30 = vld [vmem:[#allocation2 + $0x2ec] sm:$0xf0]  ;;  %v300_v32 = vld [vmem:[%s4290_s21 + $0x8] sm:$0xff]  ;;  %v3038_v36 = vor.u32 %v3800_v24, %v3037_v23  ;;  %v3042_v37 = vor.u32 %v3798_v26, %v3039_v27 }
  0x24   : > { %530 = vmatpush.bf16.msra.mxu0 %v3062_v4  ;;  %579 = vmatpush.bf16.msra.mxu1 %v3066_v5  ;;  %v3525_v29 = vld [vmem:[#allocation2 + $0x2e0] sm:$0xf]  ;;  %v3955_v34 = vld [vmem:[#allocation2 + $0x3ec] sm:$0xf0]  ;;  %v315_v41 = vpack.c.bf16 %v300_v32, %v299_v28  ;;  %v302_v60 = vld [vmem:[%s4290_s21 + $0x18] sm:$0xff] }
  0x25   : > { %628 = vmatpush.bf16.msra.mxu2 %v3070_v6  ;;  %v3653_v33 = vld [vmem:[#allocation2 + $0x3e0] sm:$0xf]  ;;  %v3526_v38 = vor.u32 %v3923_v30, %v3525_v29  ;;  %v3859_v40 = vld [vmem:[#allocation2 + $0xec] sm:$0xf0]  ;;  %v304_v11 = vld [vmem:[%s4290_s21 + $0x28] sm:$0xff] }
  0x26   : > { %677 = vmatpush.bf16.msra.mxu3 %v3074_v10  ;;  %v3269_v39 = vld [vmem:[#allocation2 + $0xe0] sm:$0xf]  ;;  %v3654_v42 = vor.u32 %v3955_v34, %v3653_v33  ;;  %v3891_v44 = vld [vmem:[#allocation2 + $0x1ec] sm:$0xf0]  ;;  %v306_v26 = vld [vmem:[%s4290_s21 + $0x38] sm:$0xff] }
  0x27   : > { %v3397_v43 = vld [vmem:[#allocation2 + $0x1e0] sm:$0xf]  ;;  %v3270_v45 = vor.u32 %v3859_v40, %v3269_v39  ;;  %v3919_v48 = vld [vmem:[#allocation2 + $0x2cc] sm:$0xf0] }
  0x28   : > { %531 = vmatpush.bf16.msra.mxu0 %v3046_v16  ;;  %580 = vmatpush.bf16.msra.mxu1 %v3050_v20  ;;  %v3398_v46 = vor.u32 %v3891_v44, %v3397_v43  ;;  %v3509_v47 = vld [vmem:[#allocation2 + $0x2c0] sm:$0xf]  ;;  %v3855_v51 = vld [vmem:[#allocation2 + $0xcc] sm:$0xf0] }
  0x29   : > { %629 = vmatpush.bf16.msra.mxu2 %v3054_v21  ;;  %v3253_v49 = vld [vmem:[#allocation2 + $0xc0] sm:$0xf]  ;;  %v3510_v50 = vor.u32 %v3919_v48, %v3509_v47  ;;  %v3951_v53 = vld [vmem:[#allocation2 + $0x3cc] sm:$0xf0] }
  0x2a   : > { %678 = vmatpush.bf16.msra.mxu3 %v3058_v25  ;;  %v3637_v52 = vld [vmem:[#allocation2 + $0x3c0] sm:$0xf]  ;;  %v3254_v54 = vor.u32 %v3855_v51, %v3253_v49  ;;  %v3887_v57 = vld [vmem:[#allocation2 + $0x1cc] sm:$0xf0] }
  0x2b   : > { %v3638_v55 = vor.u32 %v3951_v53, %v3637_v52  ;;  %v3381_v56 = vld [vmem:[#allocation2 + $0x1c0] sm:$0xf]  ;;  %v301_v59 = vld [vmem:[%s4290_s21 + $0x10] sm:$0xff] }
  0x2c   : > { %532 = vmatpush.bf16.msra.mxu0 %v3030_v31  ;;  %581 = vmatpush.bf16.msra.mxu1 %v3034_v35  ;;  %v3382_v58 = vor.u32 %v3887_v57, %v3381_v56  ;;  %v316_v61 = vpack.c.bf16 %v302_v60, %v301_v59  ;;  %v3493_v62 = vld [vmem:[#allocation2 + $0x2a0] sm:$0xf]  ;;  %v3915_v63 = vld [vmem:[#allocation2 + $0x2ac] sm:$0xf0]  ;;  %v310_v56 = vld [vmem:[%s4290_s21 + $0x58] sm:$0xff] }
  0x2d   : > { %630 = vmatpush.bf16.msra.mxu2 %v3038_v36  ;;  %v3237_v0 = vld [vmem:[#allocation2 + $0xa0] sm:$0xf]  ;;  %v3494_v1 = vor.u32 %v3915_v63, %v3493_v62  ;;  %v3851_v2 = vld [vmem:[#allocation2 + $0xac] sm:$0xf0] }
  0x2e   : > { %679 = vmatpush.bf16.msra.mxu3 %v3042_v37  ;;  %v3621_v3 = vld [vmem:[#allocation2 + $0x3a0] sm:$0xf]  ;;  %v3947_v4 = vld [vmem:[#allocation2 + $0x3ac] sm:$0xf0]  ;;  %v3238_v5 = vor.u32 %v3851_v2, %v3237_v0 }
  0x2f   : > { %533 = vmatmul.bf16.vlgmr.msra.gmra.mxu0 %v315_v41  ;;  %582 = vmatmul.bf16.vlgmr.msra.gmra.mxu1 %v315_v41  ;;  %v3622_v6 = vor.u32 %v3947_v4, %v3621_v3  ;;  %v3365_v7 = vld [vmem:[#allocation2 + $0x1a0] sm:$0xf]  ;;  %v3883_v8 = vld [vmem:[#allocation2 + $0x1ac] sm:$0xf0] }
  0x30   : > { %631 = vmatmul.bf16.vlgmr.msra.gmra.mxu2 %v315_v41  ;;  %1595 = vmatpush.bf16.msrb.mxu0 %v3270_v45  ;;  %v3366_v9 = vor.u32 %v3883_v8, %v3365_v7  ;;  %v303_v10 = vld [vmem:[%s4290_s21 + $0x20] sm:$0xff]  ;;  %v3911_v14 = vld [vmem:[#allocation2 + $0x28c] sm:$0xf0]  ;;  %v312_v7 = vld [vmem:[%s4290_s21 + $0x68] sm:$0xff] }
  0x31   : > { %1693 = vmatpush.bf16.msrb.mxu2 %v3526_v38  ;;  %680 = vmatmul.bf16.vlgmr.msra.gmra.mxu3 %v315_v41  ;;  %v317_v12 = vpack.c.bf16 %v304_v11, %v303_v10  ;;  %v3477_v13 = vld [vmem:[#allocation2 + $0x280] sm:$0xf]  ;;  %v3847_v17 = vld [vmem:[#allocation2 + $0x8c] sm:$0xf0]  ;;  %v308_v41 = vld [vmem:[%s4290_s21 + $0x48] sm:$0xff] }
  0x32   : > { %1742 = vmatpush.bf16.msrb.mxu3 %v3654_v42  ;;  %1644 = vmatpush.bf16.msrb.mxu1 %v3398_v46  ;;  %v3221_v15 = vld [vmem:[#allocation2 + $0x80] sm:$0xf]  ;;  %v3478_v16 = vor.u32 %v3911_v14, %v3477_v13  ;;  %v3943_v19 = vld [vmem:[#allocation2 + $0x38c] sm:$0xf0]  ;;  %v314_v13 = vld [vmem:[%s4290_s21 + $0x78] sm:$0xff] }
  0x33   : > { %v3605_v18 = vld [vmem:[#allocation2 + $0x380] sm:$0xf]  ;;  %v3222_v20 = vor.u32 %v3847_v17, %v3221_v15  ;;  %v3879_v23 = vld [vmem:[#allocation2 + $0x18c] sm:$0xf0] }
  0x34   : > { %1596 = vmatpush.bf16.msrb.mxu0 %v3254_v54  ;;  %v3606_v21 = vor.u32 %v3943_v19, %v3605_v18  ;;  %v3349_v22 = vld [vmem:[#allocation2 + $0x180] sm:$0xf]  ;;  %v305_v25 = vld [vmem:[%s4290_s21 + $0x30] sm:$0xff] }
  0x35   : > { %1694 = vmatpush.bf16.msrb.mxu2 %v3510_v50  ;;  %v3350_v24 = vor.u32 %v3879_v23, %v3349_v22  ;;  %v318_v27 = vpack.c.bf16 %v306_v26, %v305_v25  ;;  %v3461_v28 = vld [vmem:[#allocation2 + $0x260] sm:$0xf]  ;;  %v3907_v29 = vld [vmem:[#allocation2 + $0x26c] sm:$0xf0]  ;;  %v3527_v25 = vld [vmem:[#allocation2 + $0x2f0] sm:$0xf0] }
  0x36   : > { %1743 = vmatpush.bf16.msrb.mxu3 %v3638_v55  ;;  %1645 = vmatpush.bf16.msrb.mxu1 %v3382_v58  ;;  %v3205_v30 = vld [vmem:[#allocation2 + $0x60] sm:$0xf]  ;;  %v3462_v31 = vor.u32 %v3907_v29, %v3461_v28  ;;  %v3843_v32 = vld [vmem:[#allocation2 + $0x6c] sm:$0xf0]  ;;  %v3271_v28 = vld [vmem:[#allocation2 + $0xf0] sm:$0xf0] }
  0x37   : > { %v3589_v33 = vld [vmem:[#allocation2 + $0x360] sm:$0xf]  ;;  %v3939_v34 = vld [vmem:[#allocation2 + $0x36c] sm:$0xf0]  ;;  %v3206_v35 = vor.u32 %v3843_v32, %v3205_v30  ;;  %v3953_v29 = vld [vmem:[#allocation2 + $0x3e4] sm:$0xf] }
  0x38   : > { %1597 = vmatpush.bf16.msrb.mxu0 %v3238_v5  ;;  %v3590_v36 = vor.u32 %v3939_v34, %v3589_v33  ;;  %v3333_v37 = vld [vmem:[#allocation2 + $0x160] sm:$0xf]  ;;  %v3875_v38 = vld [vmem:[#allocation2 + $0x16c] sm:$0xf0]  ;;  %v3889_v33 = vld [vmem:[#allocation2 + $0x1e4] sm:$0xf] }
  0x39   : > { %1695 = vmatpush.bf16.msrb.mxu2 %v3494_v1  ;;  %v3334_v39 = vor.u32 %v3875_v38, %v3333_v37  ;;  %v307_v40 = vld [vmem:[%s4290_s21 + $0x40] sm:$0xff]  ;;  %v3903_v44 = vld [vmem:[#allocation2 + $0x24c] sm:$0xf0]  ;;  %v3399_v34 = vld [vmem:[#allocation2 + $0x1f0] sm:$0xf0] }
  0x3a   : > { %1744 = vmatpush.bf16.msrb.mxu3 %v3622_v6  ;;  %1646 = vmatpush.bf16.msrb.mxu1 %v3366_v9  ;;  %v319_v42 = vpack.c.bf16 %v308_v41, %v307_v40  ;;  %v3445_v43 = vld [vmem:[#allocation2 + $0x240] sm:$0xf]  ;;  %v3839_v47 = vld [vmem:[#allocation2 + $0x4c] sm:$0xf0] }
  0x3b   : > { %v3189_v45 = vld [vmem:[#allocation2 + $0x40] sm:$0xf]  ;;  %v3446_v46 = vor.u32 %v3903_v44, %v3445_v43  ;;  %v3935_v49 = vld [vmem:[#allocation2 + $0x34c] sm:$0xf0]  ;;  %v3917_v44 = vld [vmem:[#allocation2 + $0x2c4] sm:$0xf] }
  0x3c   : > { %1598 = vmatpush.bf16.msrb.mxu0 %v3222_v20  ;;  %v3573_v48 = vld [vmem:[#allocation2 + $0x340] sm:$0xf]  ;;  %v3190_v50 = vor.u32 %v3839_v47, %v3189_v45  ;;  %v3871_v53 = vld [vmem:[#allocation2 + $0x14c] sm:$0xf0]  ;;  %v3511_v45 = vld [vmem:[#allocation2 + $0x2d0] sm:$0xf0] }
  0x3d   : > { %1696 = vmatpush.bf16.msrb.mxu2 %v3478_v16  ;;  %v3574_v51 = vor.u32 %v3935_v49, %v3573_v48  ;;  %v3317_v52 = vld [vmem:[#allocation2 + $0x140] sm:$0xf]  ;;  %v309_v55 = vld [vmem:[%s4290_s21 + $0x50] sm:$0xff]  ;;  %v3514_v48 = vor.u32 %v3917_v44, %v3511_v45  ;;  %v3881_v45 = vld [vmem:[#allocation2 + $0x1a4] sm:$0xf] }
  0x3e   : > { %1745 = vmatpush.bf16.msrb.mxu3 %v3606_v21  ;;  %1647 = vmatpush.bf16.msrb.mxu1 %v3350_v24  ;;  %v3318_v54 = vor.u32 %v3871_v53, %v3317_v52  ;;  %v320_v57 = vpack.c.bf16 %v310_v56, %v309_v55  ;;  %v3429_v58 = vld [vmem:[#allocation2 + $0x220] sm:$0xf]  ;;  %v3899_v59 = vld [vmem:[#allocation2 + $0x22c] sm:$0xf0]  ;;  %v3921_v24 = vld [vmem:[#allocation2 + $0x2e4] sm:$0xf] }
  0x3f   : > { %538 = vmatmul.bf16.gmra.mxu0 %v316_v61  ;;  %587 = vmatmul.bf16.gmra.mxu1 %v316_v61  ;;  %v3173_v60 = vld [vmem:[#allocation2 + $0x20] sm:$0xf]  ;;  %v3835_v62 = vld [vmem:[#allocation2 + $0x2c] sm:$0xf0]  ;;  %v3530_v26 = vor.u32 %v3921_v24, %v3527_v25 }
  0x40   : > { %636 = vmatmul.bf16.gmra.mxu2 %v316_v61  ;;  %1599 = vmatpush.bf16.msrb.mxu0 %v3206_v35  ;;  %v3557_v63 = vld [vmem:[#allocation2 + $0x320] sm:$0xf]  ;;  %v3931_v0 = vld [vmem:[#allocation2 + $0x32c] sm:$0xf0]  ;;  %v3174_v1 = vor.u32 %v3835_v62, %v3173_v60  ;;  %v3402_v35 = vor.u32 %v3889_v33, %v3399_v34  ;;  %v3639_v62 = vld [vmem:[#allocation2 + $0x3d0] sm:$0xf0] }
  0x41   : > { %685 = vmatmul.bf16.gmra.mxu3 %v316_v61  ;;  %1697 = vmatpush.bf16.msrb.mxu2 %v3462_v31  ;;  %v3430_v61 = vor.u32 %v3899_v59, %v3429_v58  ;;  %v3558_v2 = vor.u32 %v3931_v0, %v3557_v63  ;;  %v3301_v3 = vld [vmem:[#allocation2 + $0x120] sm:$0xf]  ;;  %v3867_v4 = vld [vmem:[#allocation2 + $0x12c] sm:$0xf0]  ;;  %v3655_v31 = vld [vmem:[#allocation2 + $0x3f0] sm:$0xf0] }
  0x42   : > { %1746 = vmatpush.bf16.msrb.mxu3 %v3590_v36  ;;  %1648 = vmatpush.bf16.msrb.mxu1 %v3334_v39  ;;  %v3302_v5 = vor.u32 %v3867_v4, %v3301_v3  ;;  %v311_v6 = vld [vmem:[%s4290_s21 + $0x60] sm:$0xff]  ;;  %v3895_v10 = vld [vmem:[#allocation2 + $0x20c] sm:$0xf0]  ;;  %v3658_v32 = vor.u32 %v3953_v29, %v3655_v31  ;;  %v3255_v58 = vld [vmem:[#allocation2 + $0xd0] sm:$0xf0] }
  0x43   : > { %v321_v8 = vpack.c.bf16 %v312_v7, %v311_v6  ;;  %v3413_v9 = vld [vmem:[#allocation2 + $0x200] sm:$0xf]  ;;  %v3831_v15 = vld [vmem:[#allocation2 + $0xc] sm:$0xf0]  ;;  %v3885_v3 = vld [vmem:[#allocation2 + $0x1c4] sm:$0xf] }
  0x44   : > { %1600 = vmatpush.bf16.msrb.mxu0 %v3190_v50  ;;  %v3414_v11 = vor.u32 %v3895_v10, %v3413_v9  ;;  %v3157_v14 = vld [vmem:[#allocation2] sm:$0xf]  ;;  %v3927_v18 = vld [vmem:[#allocation2 + $0x30c] sm:$0xf0]  ;;  %v3383_v4 = vld [vmem:[#allocation2 + $0x1d0] sm:$0xf0] }
  0x45   : > { %1698 = vmatpush.bf16.msrb.mxu2 %v3446_v46  ;;  %v3541_v16 = vld [vmem:[#allocation2 + $0x300] sm:$0xf]  ;;  %v3158_v17 = vor.u32 %v3831_v15, %v3157_v14  ;;  %v3863_v20 = vld [vmem:[#allocation2 + $0x10c] sm:$0xf0]  ;;  %v3386_v7 = vor.u32 %v3885_v3, %v3383_v4  ;;  %v3849_v33 = vld [vmem:[#allocation2 + $0xa4] sm:$0xf] }
  0x46   : > { %1747 = vmatpush.bf16.msrb.mxu3 %v3574_v51  ;;  %1649 = vmatpush.bf16.msrb.mxu1 %v3318_v54  ;;  %v3285_v19 = vld [vmem:[#allocation2 + $0x100] sm:$0xf]  ;;  %v3542_v21 = vor.u32 %v3927_v18, %v3541_v16  ;;  %v3239_v34 = vld [vmem:[#allocation2 + $0xb0] sm:$0xf0]  ;;  %v3909_v4 = vld [vmem:[#allocation2 + $0x284] sm:$0xf] }
  0x47   : > { %v3286_v22 = vor.u32 %v3863_v20, %v3285_v19  ;;  %v355_v36 = vld [vmem:[%s4918_s2] sm:$0xf] }
  0x48   : > { %1601 = vmatpush.bf16.msrb.mxu0 %v3174_v1  ;;  %v4335_v38 = vperm.slane %v355_v36, 0  ;;  %v4337_v40 = vperm.slane %v355_v36, 1  ;;  %v4342_v53 = vperm.slane %v355_v36, 2  ;;  %v4345_v55 = vperm.slane %v355_v36, 3 }
  0x49   : > { %1699 = vmatpush.bf16.msrb.mxu2 %v3430_v61  ;;  %v3949_v61 = vld [vmem:[#allocation2 + $0x3c4] sm:$0xf]  ;;  %v3242_v36 = vor.u32 %v3849_v33, %v3239_v34 }
  0x4a   : > { %1748 = vmatpush.bf16.msrb.mxu3 %v3558_v2  ;;  %1650 = vmatpush.bf16.msrb.mxu1 %v3302_v5  ;;  %v3642_v0 = vor.u32 %v3949_v61, %v3639_v62 }
  0x4c   : > { %1602 = vmatpush.bf16.msrb.mxu0 %v3158_v17 }
  0x4d   : > { %1700 = vmatpush.bf16.msrb.mxu2 %v3414_v11 }
  0x4e   : > { %1749 = vmatpush.bf16.msrb.mxu3 %v3542_v21  ;;  %1651 = vmatpush.bf16.msrb.mxu1 %v3286_v22  ;;  %v3913_v22 = vld [vmem:[#allocation2 + $0x2a4] sm:$0xf] }
  0x4f   : > { %543 = vmatmul.bf16.gmra.mxu0 %v317_v12  ;;  %592 = vmatmul.bf16.gmra.mxu1 %v317_v12 }
  0x50   : > { %641 = vmatmul.bf16.gmra.mxu2 %v317_v12 }
  0x51   : > { %690 = vmatmul.bf16.gmra.mxu3 %v317_v12  ;;  %v313_v12 = vld [vmem:[%s4290_s21 + $0x70] sm:$0xff]  ;;  %1889 = vmatpush.bf16.msra.mxu2 %v3530_v26 }
  0x52   : > { %v322_v23 = vpack.c.bf16 %v314_v13, %v313_v12  ;;  %1938 = vmatpush.bf16.msra.mxu3 %v3658_v32  ;;  %1840 = vmatpush.bf16.msra.mxu1 %v3402_v35 }
  0x55   : > { %1890 = vmatpush.bf16.msra.mxu2 %v3514_v48 }
  0x56   : > { %1939 = vmatpush.bf16.msra.mxu3 %v3642_v0  ;;  %1841 = vmatpush.bf16.msra.mxu1 %v3386_v7 }
  0x5f   : > { %548 = vmatmul.bf16.gmra.mxu0 %v318_v27  ;;  %597 = vmatmul.bf16.gmra.mxu1 %v318_v27 }
  0x60   : > { %646 = vmatmul.bf16.gmra.mxu2 %v318_v27 }
  0x61   : > { %695 = vmatmul.bf16.gmra.mxu3 %v318_v27  ;;  %v3857_v27 = vld [vmem:[#allocation2 + $0xe4] sm:$0xf] }
  0x62   : > { %v3274_v30 = vor.u32 %v3857_v27, %v3271_v28 }
  0x64   : > { %1791 = vmatpush.bf16.msra.mxu0 %v3274_v30 }
  0x6f   : > { %553 = vmatmul.bf16.gmra.mxu0 %v319_v42  ;;  %602 = vmatmul.bf16.gmra.mxu1 %v319_v42 }
  0x70   : > { %651 = vmatmul.bf16.gmra.mxu2 %v319_v42 }
  0x71   : > { %700 = vmatmul.bf16.gmra.mxu3 %v319_v42 }
  0x7f   : > { %558 = vmatmul.bf16.gmra.mxu0 %v320_v57  ;;  %607 = vmatmul.bf16.gmra.mxu1 %v320_v57 }
  0x80   : > { %656 = vmatmul.bf16.gmra.mxu2 %v320_v57 }
  0x81   : > { %705 = vmatmul.bf16.gmra.mxu3 %v320_v57  ;;  %v3853_v57 = vld [vmem:[#allocation2 + $0xc4] sm:$0xf] }
  0x82   : > { %v3258_v60 = vor.u32 %v3853_v57, %v3255_v58 }
  0x84   : > { %1792 = vmatpush.bf16.msra.mxu0 %v3258_v60 }
  0x88   : > { %1793 = vmatpush.bf16.msra.mxu0 %v3242_v36 }
  0x8f   : > { %563 = vmatmul.bf16.gmra.mxu0 %v321_v8  ;;  %612 = vmatmul.bf16.gmra.mxu1 %v321_v8 }
  0x90   : > { %661 = vmatmul.bf16.gmra.mxu2 %v321_v8 }
  0x91   : > { %710 = vmatmul.bf16.gmra.mxu3 %v321_v8 }
  0x9f   : > { %568 = vmatmul.bf16.gmra.mxu0 %v322_v23  ;;  %617 = vmatmul.bf16.gmra.mxu1 %v322_v23 }
  0xa0   : > { %666 = vmatmul.bf16.gmra.mxu2 %v322_v23 }
  0xa1   : > { %715 = vmatmul.bf16.gmra.mxu3 %v322_v23  ;;  %v3495_v23 = vld [vmem:[#allocation2 + $0x2b0] sm:$0xf0] }
  0xa2   : > { %v3498_v26 = vor.u32 %v3913_v22, %v3495_v23  ;;  %v3607_v22 = vld [vmem:[#allocation2 + $0x390] sm:$0xf0] }
  0xa4   : > { %1891 = vmatpush.bf16.msra.mxu2 %v3498_v26 }
  0xac   : > { %v534_v37 = vpop.f32.mrf.mxu0  ;;  %v583_v39 = vpop.f32.mrf.mxu1 }
  0xad   : > { %v535_v41 = vadd.f32 %v534_v37, %v4335_v38  ;;  %v584_v42 = vadd.f32 %v583_v39, %v4337_v40  ;;  %v3945_v37 = vld [vmem:[#allocation2 + $0x3a4] sm:$0xf]  ;;  %v3623_v39 = vld [vmem:[#allocation2 + $0x3b0] sm:$0xf0] }
  0xaf   : > { %v721_v49 = vmax.f32 %v535_v41, 0.0  ;;  %v722_v52 = vmax.f32 %v584_v42, 0.0  ;;  %v3626_v42 = vor.u32 %v3945_v37, %v3623_v39 }
  0xb1   : > { %1940 = vmatpush.bf16.msra.mxu3 %v3626_v42 }
  0xb3   : > { %v632_v43 = vpop.f32.mrf.mxu2 }
  0xb4   : > { %v681_v46 = vpop.f32.mrf.mxu3  ;;  %v536_v47 = vpop.f32.mrf.mxu0  ;;  %v633_v1 = vadd.f32 %v632_v43, %v4342_v53 }
  0xb5   : > { %v537_v50 = vadd.f32 %v536_v47, %v4335_v38  ;;  %v585_v51 = vpop.f32.mrf.mxu1  ;;  %v682_v5 = vadd.f32 %v681_v46, %v4345_v55  ;;  %v3367_v46 = vld [vmem:[#allocation2 + $0x1b0] sm:$0xf0] }
  0xb6   : > { %v586_v54 = vadd.f32 %v585_v51, %v4337_v40  ;;  %v723_v13 = vmax.f32 %v633_v1, 0.0 }
  0xb7   : > { %v725_v56 = vmax.f32 %v537_v50, 0.0  ;;  %v724_v15 = vmax.f32 %v682_v5, 0.0  ;;  %v3479_v5 = vld [vmem:[#allocation2 + $0x290] sm:$0xf0] }
  0xb8   : > { %v726_v59 = vmax.f32 %v586_v54, 0.0 }
  0xb9   : > { %v4347_v63 = vpack.c.bf16 %v725_v56, %v721_v49  ;;  %v3370_v49 = vor.u32 %v3881_v45, %v3367_v46 }
  0xba   : > { %v4350_v2 = vpack.c.bf16 %v726_v59, %v722_v52 }
  0xbb   : > { %v634_v6 = vpop.f32.mrf.mxu2  ;;  %1603 = vmatmul.bf16.vlgmr.msrb.gmra.mxu0 %v4347_v63  ;;  %1842 = vmatpush.bf16.msra.mxu1 %v3370_v49 }
  0xbc   : > { %v635_v8 = vadd.f32 %v634_v6, %v4342_v53  ;;  %v683_v9 = vpop.f32.mrf.mxu3  ;;  %1652 = vmatmul.bf16.vlgmr.msrb.gmra.mxu1 %v4350_v2  ;;  %v539_v10 = vpop.f32.mrf.mxu0 }
  0xbd   : > { %v684_v11 = vadd.f32 %v683_v9, %v4345_v55  ;;  %v588_v12 = vpop.f32.mrf.mxu1  ;;  %v540_v19 = vadd.f32 %v539_v10, %v4335_v38 }
  0xbe   : > { %v727_v14 = vmax.f32 %v635_v8, 0.0  ;;  %v589_v20 = vadd.f32 %v588_v12, %v4337_v40  ;;  %v3482_v8 = vor.u32 %v3909_v4, %v3479_v5  ;;  %v3207_v4 = vld [vmem:[#allocation2 + $0x70] sm:$0xf0] }
  0xbf   : > { %v728_v16 = vmax.f32 %v684_v11, 0.0  ;;  %v729_v27 = vmax.f32 %v540_v19, 0.0 }
  0xc0   : > { %v4357_v17 = vpack.c.bf16 %v727_v14, %v723_v13  ;;  %v730_v30 = vmax.f32 %v589_v20, 0.0  ;;  %1892 = vmatpush.bf16.msra.mxu2 %v3482_v8  ;;  %v3591_v8 = vld [vmem:[#allocation2 + $0x370] sm:$0xf0] }
  0xc1   : > { %v4359_v18 = vpack.c.bf16 %v728_v16, %v724_v15  ;;  %v3845_v15 = vld [vmem:[#allocation2 + $0x84] sm:$0xf]  ;;  %v3223_v16 = vld [vmem:[#allocation2 + $0x90] sm:$0xf0] }
  0xc2   : > { %1701 = vmatmul.bf16.vlgmr.msrb.gmra.mxu2 %v4357_v17  ;;  %v3226_v20 = vor.u32 %v3845_v15, %v3223_v16 }
  0xc3   : > { %1750 = vmatmul.bf16.vlgmr.msrb.gmra.mxu3 %v4359_v18  ;;  %v637_v21 = vpop.f32.mrf.mxu2 }
  0xc4   : > { %v686_v24 = vpop.f32.mrf.mxu3  ;;  %v541_v25 = vpop.f32.mrf.mxu0  ;;  %v638_v43 = vadd.f32 %v637_v21, %v4342_v53  ;;  %v3941_v21 = vld [vmem:[#allocation2 + $0x384] sm:$0xf]  ;;  %1794 = vmatpush.bf16.msra.mxu0 %v3226_v20 }
  0xc5   : > { %v542_v28 = vadd.f32 %v541_v25, %v4335_v38  ;;  %v590_v29 = vpop.f32.mrf.mxu1  ;;  %v687_v47 = vadd.f32 %v686_v24, %v4345_v55  ;;  %v3610_v24 = vor.u32 %v3941_v21, %v3607_v22 }
  0xc6   : > { %v591_v31 = vadd.f32 %v590_v29, %v4337_v40  ;;  %v731_v57 = vmax.f32 %v638_v43, 0.0 }
  0xc7   : > { %v733_v32 = vmax.f32 %v542_v28, 0.0  ;;  %v732_v59 = vmax.f32 %v687_v47, 0.0  ;;  %v3351_v28 = vld [vmem:[#allocation2 + $0x190] sm:$0xf0]  ;;  %1941 = vmatpush.bf16.msra.mxu3 %v3610_v24 }
  0xc8   : > { %v734_v35 = vmax.f32 %v591_v31, 0.0 }
  0xc9   : > { %v4367_v41 = vpack.c.bf16 %v733_v32, %v729_v27  ;;  %v3877_v27 = vld [vmem:[#allocation2 + $0x184] sm:$0xf] }
  0xca   : > { %v4370_v44 = vpack.c.bf16 %v734_v35, %v730_v30  ;;  %v3354_v31 = vor.u32 %v3877_v27, %v3351_v28 }
  0xcb   : > { %v639_v48 = vpop.f32.mrf.mxu2  ;;  %1608 = vmatmul.bf16.gmra.mxu0 %v4367_v41 }
  0xcc   : > { %v640_v50 = vadd.f32 %v639_v48, %v4342_v53  ;;  %v688_v51 = vpop.f32.mrf.mxu3  ;;  %1657 = vmatmul.bf16.gmra.mxu1 %v4370_v44  ;;  %v544_v52 = vpop.f32.mrf.mxu0 }
  0xcd   : > { %v689_v54 = vadd.f32 %v688_v51, %v4345_v55  ;;  %v593_v56 = vpop.f32.mrf.mxu1  ;;  %v545_v0 = vadd.f32 %v544_v52, %v4335_v38  ;;  %1843 = vmatpush.bf16.msra.mxu1 %v3354_v31  ;;  %v3463_v51 = vld [vmem:[#allocation2 + $0x270] sm:$0xf0] }
  0xce   : > { %v735_v58 = vmax.f32 %v640_v50, 0.0  ;;  %v594_v1 = vadd.f32 %v593_v56, %v4337_v40  ;;  %v3905_v50 = vld [vmem:[#allocation2 + $0x264] sm:$0xf] }
  0xcf   : > { %v736_v60 = vmax.f32 %v689_v54, 0.0  ;;  %v737_v9 = vmax.f32 %v545_v0, 0.0  ;;  %v3466_v56 = vor.u32 %v3905_v50, %v3463_v51 }
  0xd0   : > { %v4377_v61 = vpack.c.bf16 %v735_v58, %v731_v57  ;;  %v738_v12 = vmax.f32 %v594_v1, 0.0 }
  0xd1   : > { %v4379_v62 = vpack.c.bf16 %v736_v60, %v732_v59  ;;  %1893 = vmatpush.bf16.msra.mxu2 %v3466_v56  ;;  %v3191_v56 = vld [vmem:[#allocation2 + $0x50] sm:$0xf0] }
  0xd2   : > { %1706 = vmatmul.bf16.gmra.mxu2 %v4377_v61 }
  0xd3   : > { %1755 = vmatmul.bf16.gmra.mxu3 %v4379_v62  ;;  %v642_v3 = vpop.f32.mrf.mxu2 }
  0xd4   : > { %v691_v6 = vpop.f32.mrf.mxu3  ;;  %v546_v7 = vpop.f32.mrf.mxu0  ;;  %v643_v25 = vadd.f32 %v642_v3, %v4342_v53  ;;  %v3841_v3 = vld [vmem:[#allocation2 + $0x64] sm:$0xf] }
  0xd5   : > { %v547_v10 = vadd.f32 %v546_v7, %v4335_v38  ;;  %v595_v11 = vpop.f32.mrf.mxu1  ;;  %v692_v29 = vadd.f32 %v691_v6, %v4345_v55  ;;  %v3210_v6 = vor.u32 %v3841_v3, %v3207_v4  ;;  %v3937_v7 = vld [vmem:[#allocation2 + $0x364] sm:$0xf] }
  0xd6   : > { %v596_v13 = vadd.f32 %v595_v11, %v4337_v40  ;;  %v739_v37 = vmax.f32 %v643_v25, 0.0 }
  0xd7   : > { %v741_v14 = vmax.f32 %v547_v10, 0.0  ;;  %v740_v42 = vmax.f32 %v692_v29, 0.0  ;;  %v3594_v10 = vor.u32 %v3937_v7, %v3591_v8  ;;  %1795 = vmatpush.bf16.msra.mxu0 %v3210_v6  ;;  %v3319_v6 = vld [vmem:[#allocation2 + $0x150] sm:$0xf0] }
  0xd8   : > { %v742_v19 = vmax.f32 %v596_v13, 0.0  ;;  %v3873_v13 = vld [vmem:[#allocation2 + $0x164] sm:$0xf] }
  0xd9   : > { %v4387_v23 = vpack.c.bf16 %v741_v14, %v737_v9  ;;  %v3335_v14 = vld [vmem:[#allocation2 + $0x170] sm:$0xf0]  ;;  %1942 = vmatpush.bf16.msra.mxu3 %v3594_v10 }
  0xda   : > { %v4390_v26 = vpack.c.bf16 %v742_v19, %v738_v12  ;;  %v3338_v19 = vor.u32 %v3873_v13, %v3335_v14 }
  0xdb   : > { %v644_v30 = vpop.f32.mrf.mxu2  ;;  %1613 = vmatmul.bf16.gmra.mxu0 %v4387_v23 }
  0xdc   : > { %v645_v32 = vadd.f32 %v644_v30, %v4342_v53  ;;  %v693_v33 = vpop.f32.mrf.mxu3  ;;  %1662 = vmatmul.bf16.gmra.mxu1 %v4390_v26  ;;  %v549_v34 = vpop.f32.mrf.mxu0 }
  0xdd   : > { %v694_v35 = vadd.f32 %v693_v33, %v4345_v55  ;;  %v598_v36 = vpop.f32.mrf.mxu1  ;;  %v550_v47 = vadd.f32 %v549_v34, %v4335_v38  ;;  %1844 = vmatpush.bf16.msra.mxu1 %v3338_v19 }
  0xde   : > { %v743_v39 = vmax.f32 %v645_v32, 0.0  ;;  %v599_v48 = vadd.f32 %v598_v36, %v4337_v40  ;;  %v3901_v36 = vld [vmem:[#allocation2 + $0x244] sm:$0xf] }
  0xdf   : > { %v744_v43 = vmax.f32 %v694_v35, 0.0  ;;  %v745_v57 = vmax.f32 %v550_v47, 0.0 }
  0xe0   : > { %v4397_v45 = vpack.c.bf16 %v743_v39, %v739_v37  ;;  %v746_v60 = vmax.f32 %v599_v48, 0.0  ;;  %v3447_v37 = vld [vmem:[#allocation2 + $0x250] sm:$0xf0] }
  0xe1   : > { %v4399_v46 = vpack.c.bf16 %v744_v43, %v740_v42  ;;  %v3450_v43 = vor.u32 %v3901_v36, %v3447_v37 }
  0xe2   : > { %1711 = vmatmul.bf16.gmra.mxu2 %v4397_v45 }
  0xe3   : > { %1760 = vmatmul.bf16.gmra.mxu3 %v4399_v46  ;;  %v647_v49 = vpop.f32.mrf.mxu2  ;;  %1894 = vmatpush.bf16.msra.mxu2 %v3450_v43 }
  0xe4   : > { %v696_v52 = vpop.f32.mrf.mxu3  ;;  %v551_v54 = vpop.f32.mrf.mxu0  ;;  %v648_v11 = vadd.f32 %v647_v49, %v4342_v53 }
  0xe5   : > { %v552_v58 = vadd.f32 %v551_v54, %v4335_v38  ;;  %v600_v59 = vpop.f32.mrf.mxu1  ;;  %v697_v15 = vadd.f32 %v696_v52, %v4345_v55  ;;  %v3837_v54 = vld [vmem:[#allocation2 + $0x44] sm:$0xf] }
  0xe6   : > { %v601_v0 = vadd.f32 %v600_v59, %v4337_v40  ;;  %v747_v27 = vmax.f32 %v648_v11, 0.0  ;;  %v3933_v59 = vld [vmem:[#allocation2 + $0x344] sm:$0xf] }
  0xe7   : > { %v749_v1 = vmax.f32 %v552_v58, 0.0  ;;  %v748_v29 = vmax.f32 %v697_v15, 0.0  ;;  %v3194_v58 = vor.u32 %v3837_v54, %v3191_v56  ;;  %v3929_v54 = vld [vmem:[#allocation2 + $0x324] sm:$0xf]  ;;  %v3559_v56 = vld [vmem:[#allocation2 + $0x330] sm:$0xf0] }
  0xe8   : > { %v750_v5 = vmax.f32 %v601_v0, 0.0 }
  0xe9   : > { %v4407_v9 = vpack.c.bf16 %v749_v1, %v745_v57  ;;  %1796 = vmatpush.bf16.msra.mxu0 %v3194_v58  ;;  %v3562_v58 = vor.u32 %v3929_v54, %v3559_v56  ;;  %v3287_v54 = vld [vmem:[#allocation2 + $0x110] sm:$0xf0] }
  0xea   : > { %v4410_v12 = vpack.c.bf16 %v750_v5, %v746_v60  ;;  %v3575_v60 = vld [vmem:[#allocation2 + $0x350] sm:$0xf0]  ;;  %v3869_v5 = vld [vmem:[#allocation2 + $0x144] sm:$0xf] }
  0xeb   : > { %v649_v16 = vpop.f32.mrf.mxu2  ;;  %1618 = vmatmul.bf16.gmra.mxu0 %v4407_v9  ;;  %v3578_v1 = vor.u32 %v3933_v59, %v3575_v60  ;;  %v3322_v10 = vor.u32 %v3869_v5, %v3319_v6 }
  0xec   : > { %v650_v20 = vadd.f32 %v649_v16, %v4342_v53  ;;  %v698_v21 = vpop.f32.mrf.mxu3  ;;  %1667 = vmatmul.bf16.gmra.mxu1 %v4410_v12  ;;  %v554_v22 = vpop.f32.mrf.mxu0 }
  0xed   : > { %v699_v24 = vadd.f32 %v698_v21, %v4345_v55  ;;  %v603_v25 = vpop.f32.mrf.mxu1  ;;  %v555_v33 = vadd.f32 %v554_v22, %v4335_v38  ;;  %1943 = vmatpush.bf16.msra.mxu3 %v3578_v1  ;;  %1845 = vmatpush.bf16.msra.mxu1 %v3322_v10  ;;  %v3865_v1 = vld [vmem:[#allocation2 + $0x124] sm:$0xf] }
  0xee   : > { %v751_v28 = vmax.f32 %v650_v20, 0.0  ;;  %v604_v34 = vadd.f32 %v603_v25, %v4337_v40 }
  0xef   : > { %v752_v30 = vmax.f32 %v699_v24, 0.0  ;;  %v753_v47 = vmax.f32 %v555_v33, 0.0  ;;  %v3431_v33 = vld [vmem:[#allocation2 + $0x230] sm:$0xf0] }
  0xf0   : > { %v4417_v31 = vpack.c.bf16 %v751_v28, %v747_v27  ;;  %v754_v50 = vmax.f32 %v604_v34, 0.0 }
  0xf1   : > { %v4419_v32 = vpack.c.bf16 %v752_v30, %v748_v29  ;;  %v3897_v30 = vld [vmem:[#allocation2 + $0x224] sm:$0xf]  ;;  %1944 = vmatpush.bf16.msra.mxu3 %v3562_v58 }
  0xf2   : > { %1716 = vmatmul.bf16.gmra.mxu2 %v4417_v31  ;;  %v3434_v36 = vor.u32 %v3897_v30, %v3431_v33  ;;  %v3893_v30 = vld [vmem:[#allocation2 + $0x204] sm:$0xf]  ;;  %v3415_v33 = vld [vmem:[#allocation2 + $0x210] sm:$0xf0] }
  0xf3   : > { %1765 = vmatmul.bf16.gmra.mxu3 %v4419_v32  ;;  %v652_v35 = vpop.f32.mrf.mxu2 }
  0xf4   : > { %v701_v39 = vpop.f32.mrf.mxu3  ;;  %v556_v42 = vpop.f32.mrf.mxu0  ;;  %v653_v3 = vadd.f32 %v652_v35, %v4342_v53  ;;  %1895 = vmatpush.bf16.msra.mxu2 %v3434_v36 }
  0xf5   : > { %v557_v48 = vadd.f32 %v556_v42, %v4335_v38  ;;  %v605_v49 = vpop.f32.mrf.mxu1  ;;  %v702_v7 = vadd.f32 %v701_v39, %v4345_v55 }
  0xf6   : > { %v606_v51 = vadd.f32 %v605_v49, %v4337_v40  ;;  %v755_v19 = vmax.f32 %v653_v3, 0.0  ;;  %v3833_v49 = vld [vmem:[#allocation2 + $0x24] sm:$0xf]  ;;  %v3303_v3 = vld [vmem:[#allocation2 + $0x130] sm:$0xf0] }
  0xf7   : > { %v757_v52 = vmax.f32 %v557_v48, 0.0  ;;  %v756_v21 = vmax.f32 %v702_v7, 0.0  ;;  %v3306_v7 = vor.u32 %v3865_v1, %v3303_v3 }
  0xf8   : > { %v758_v57 = vmax.f32 %v606_v51, 0.0 }
  0xf9   : > { %v4427_v0 = vpack.c.bf16 %v757_v52, %v753_v47  ;;  %1846 = vmatpush.bf16.msra.mxu1 %v3306_v7 }
  0xfa   : > { %v4430_v4 = vpack.c.bf16 %v758_v57, %v754_v50  ;;  %v3175_v50 = vld [vmem:[#allocation2 + $0x30] sm:$0xf0] }
  0xfb   : > { %v654_v8 = vpop.f32.mrf.mxu2  ;;  %1623 = vmatmul.bf16.gmra.mxu0 %v4427_v0  ;;  %v3178_v52 = vor.u32 %v3833_v49, %v3175_v50 }
  0xfc   : > { %v655_v11 = vadd.f32 %v654_v8, %v4342_v53  ;;  %v703_v13 = vpop.f32.mrf.mxu3  ;;  %1672 = vmatmul.bf16.gmra.mxu1 %v4430_v4  ;;  %v559_v14 = vpop.f32.mrf.mxu0 }
  0xfd   : > { %v704_v15 = vadd.f32 %v703_v13, %v4345_v55  ;;  %v608_v16 = vpop.f32.mrf.mxu1  ;;  %v560_v27 = vadd.f32 %v559_v14, %v4335_v38  ;;  %1797 = vmatpush.bf16.msra.mxu0 %v3178_v52  ;;  %v3861_v52 = vld [vmem:[#allocation2 + $0x104] sm:$0xf] }
  0xfe   : > { %v759_v20 = vmax.f32 %v655_v11, 0.0  ;;  %v609_v28 = vadd.f32 %v608_v16, %v4337_v40 }
  0xff   : > { %v760_v22 = vmax.f32 %v704_v15, 0.0  ;;  %v761_v37 = vmax.f32 %v560_v27, 0.0 }
 0x100   : > { %v4437_v24 = vpack.c.bf16 %v759_v20, %v755_v19  ;;  %v762_v43 = vmax.f32 %v609_v28, 0.0 }
 0x101   : > { %v4439_v25 = vpack.c.bf16 %v760_v22, %v756_v21 }
 0x102   : > { %1721 = vmatmul.bf16.gmra.mxu2 %v4437_v24 }
 0x103   : > { %1770 = vmatmul.bf16.gmra.mxu3 %v4439_v25  ;;  %v657_v29 = vpop.f32.mrf.mxu2 }
 0x104   : > { %v706_v34 = vpop.f32.mrf.mxu3  ;;  %v561_v35 = vpop.f32.mrf.mxu0  ;;  %v658_v59 = vadd.f32 %v657_v29, %v4342_v53 }
 0x105   : > { %v562_v39 = vadd.f32 %v561_v35, %v4335_v38  ;;  %v610_v42 = vpop.f32.mrf.mxu1  ;;  %v707_v5 = vadd.f32 %v706_v34, %v4345_v55  ;;  %v3829_v34 = vld [vmem:[#allocation2 + $0x4] sm:$0xf] }
 0x106   : > { %v611_v47 = vadd.f32 %v610_v42, %v4337_v40  ;;  %v763_v15 = vmax.f32 %v658_v59, 0.0  ;;  %v3925_v42 = vld [vmem:[#allocation2 + $0x304] sm:$0xf]  ;;  %v3290_v59 = vor.u32 %v3861_v52, %v3287_v54 }
 0x107   : > { %v765_v48 = vmax.f32 %v562_v39, 0.0  ;;  %v764_v19 = vmax.f32 %v707_v5, 0.0  ;;  %v3159_v39 = vld [vmem:[#allocation2 + $0x10] sm:$0xf0] }
 0x108   : > { %v766_v51 = vmax.f32 %v611_v47, 0.0  ;;  %v3162_v50 = vor.u32 %v3829_v34, %v3159_v39  ;;  %1847 = vmatpush.bf16.msra.mxu1 %v3290_v59  ;;  %v3277_v39 = vld [vmem:[#allocation2 + $0xe8] sm:$0xf] }
 0x109   : > { %v4447_v57 = vpack.c.bf16 %v765_v48, %v761_v37  ;;  %v3418_v37 = vor.u32 %v3893_v30, %v3415_v33 }
 0x10a   : > { %v4450_v60 = vpack.c.bf16 %v766_v51, %v762_v43  ;;  %v3543_v43 = vld [vmem:[#allocation2 + $0x310] sm:$0xf0]  ;;  %1798 = vmatpush.bf16.msra.mxu0 %v3162_v50  ;;  %v3956_v50 = vld [vmem:[#allocation2 + $0x3f4] sm:$0xf0] }
 0x10b   : > { %v659_v6 = vpop.f32.mrf.mxu2  ;;  %1628 = vmatmul.bf16.gmra.mxu0 %v4447_v57  ;;  %v3546_v51 = vor.u32 %v3925_v42, %v3543_v43  ;;  %1896 = vmatpush.bf16.msra.mxu2 %v3418_v37  ;;  %v3924_v37 = vld [vmem:[#allocation2 + $0x2f4] sm:$0xf0] }
 0x10c   : > { %v660_v8 = vadd.f32 %v659_v6, %v4342_v53  ;;  %v708_v10 = vpop.f32.mrf.mxu3  ;;  %1677 = vmatmul.bf16.gmra.mxu1 %v4450_v60  ;;  %v564_v11 = vpop.f32.mrf.mxu0 }
 0x10d   : > { %v709_v13 = vadd.f32 %v708_v10, %v4345_v55  ;;  %v613_v14 = vpop.f32.mrf.mxu1  ;;  %v565_v27 = vadd.f32 %v564_v11, %v4335_v38  ;;  %1945 = vmatpush.bf16.msra.mxu3 %v3546_v51 }
 0x10e   : > { %v767_v16 = vmax.f32 %v660_v8, 0.0  ;;  %v614_v28 = vadd.f32 %v613_v14, %v4337_v40 }
 0x10f   : > { %v768_v20 = vmax.f32 %v709_v13, 0.0  ;;  %v769_v47 = vmax.f32 %v565_v27, 0.0 }
 0x110   : > { %v4457_v21 = vpack.c.bf16 %v767_v16, %v763_v15  ;;  %v770_v56 = vmax.f32 %v614_v28, 0.0 }
 0x111   : > { %v4459_v22 = vpack.c.bf16 %v768_v20, %v764_v19 }
 0x112   : > { %1726 = vmatmul.bf16.gmra.mxu2 %v4457_v21 }
 0x113   : > { %1775 = vmatmul.bf16.gmra.mxu3 %v4459_v22  ;;  %v662_v29 = vpop.f32.mrf.mxu2 }
 0x114   : > { %v711_v35 = vpop.f32.mrf.mxu3  ;;  %v566_v36 = vpop.f32.mrf.mxu0  ;;  %v663_v6 = vadd.f32 %v662_v29, %v4342_v53 }
 0x115   : > { %v567_v48 = vadd.f32 %v566_v36, %v4335_v38  ;;  %v615_v49 = vpop.f32.mrf.mxu1  ;;  %v712_v8 = vadd.f32 %v711_v35, %v4345_v55  ;;  %v3533_v36 = vld [vmem:[#allocation2 + $0x2e8] sm:$0xf] }
 0x116   : > { %v616_v58 = vadd.f32 %v615_v49, %v4337_v40  ;;  %v771_v19 = vmax.f32 %v663_v6, 0.0  ;;  %v3661_v49 = vld [vmem:[#allocation2 + $0x3e8] sm:$0xf] }
 0x117   : > { %v773_v1 = vmax.f32 %v567_v48, 0.0  ;;  %v772_v27 = vmax.f32 %v712_v8, 0.0  ;;  %v3860_v48 = vld [vmem:[#allocation2 + $0xf4] sm:$0xf0] }
 0x118   : > { %v774_v3 = vmax.f32 %v616_v58, 0.0  ;;  %v3662_v58 = vor.u32 %v3956_v50, %v3661_v49  ;;  %v3952_v49 = vld [vmem:[#allocation2 + $0x3d4] sm:$0xf0] }
 0x119   : > { %v4467_v5 = vpack.c.bf16 %v773_v1, %v769_v47  ;;  %v3534_v47 = vor.u32 %v3924_v37, %v3533_v36  ;;  %v4502_v36 = vld [vmem:[%s4920_s4] sm:$0xf] }
 0x11a   : > { %v4470_v7 = vpack.c.bf16 %v774_v3, %v770_v56  ;;  %v3278_v56 = vor.u32 %v3860_v48, %v3277_v39  ;;  %2134 = vmatpush.bf16.msrb.mxu3 %v3662_v58  ;;  %v3920_v39 = vld [vmem:[#allocation2 + $0x2d4] sm:$0xf0]  ;;  %v3645_v48 = vld [vmem:[#allocation2 + $0x3c8] sm:$0xf] }
 0x11b   : > { %v664_v10 = vpop.f32.mrf.mxu2  ;;  %1633 = vmatmul.bf16.gmra.mxu0 %v4467_v5  ;;  %2085 = vmatpush.bf16.msrb.mxu2 %v3534_v47  ;;  %v3856_v47 = vld [vmem:[#allocation2 + $0xd4] sm:$0xf0]  ;;  %v3389_v58 = vld [vmem:[#allocation2 + $0x1c8] sm:$0xf] }
 0x11c   : > { %v665_v11 = vadd.f32 %v664_v10, %v4342_v53  ;;  %v713_v13 = vpop.f32.mrf.mxu3  ;;  %1682 = vmatmul.bf16.gmra.mxu1 %v4470_v7  ;;  %v569_v14 = vpop.f32.mrf.mxu0  ;;  %1987 = vmatpush.bf16.msrb.mxu0 %v3278_v56 }
 0x11d   : > { %v714_v15 = vadd.f32 %v713_v13, %v4345_v55  ;;  %v618_v16 = vpop.f32.mrf.mxu1  ;;  %v570_v33 = vadd.f32 %v569_v14, %v4335_v38  ;;  %v3405_v13 = vld [vmem:[#allocation2 + $0x1e8] sm:$0xf]  ;;  %v3892_v14 = vld [vmem:[#allocation2 + $0x1f4] sm:$0xf0] }
 0x11e   : > { %v775_v20 = vmax.f32 %v665_v11, 0.0  ;;  %v619_v34 = vadd.f32 %v618_v16, %v4337_v40  ;;  %v3406_v16 = vor.u32 %v3892_v14, %v3405_v13 }
 0x11f   : > { %v776_v28 = vmax.f32 %v714_v15, 0.0  ;;  %v777_v51 = vmax.f32 %v570_v33, 0.0 }
 0x120   : > { %v4477_v29 = vpack.c.bf16 %v775_v20, %v771_v19  ;;  %v778_v59 = vmax.f32 %v619_v34, 0.0  ;;  %2036 = vmatpush.bf16.msrb.mxu1 %v3406_v16  ;;  %v3245_v16 = vld [vmem:[#allocation2 + $0xa8] sm:$0xf] }
 0x121   : > { %v4479_v30 = vpack.c.bf16 %v776_v28, %v772_v27 }
 0x122   : > { %1731 = vmatmul.bf16.gmra.mxu2 %v4477_v29 }
 0x123   : > { %1780 = vmatmul.bf16.gmra.mxu3 %v4479_v30  ;;  %v667_v35 = vpop.f32.mrf.mxu2 }
 0x124   : > { %v716_v42 = vpop.f32.mrf.mxu3  ;;  %v571_v43 = vpop.f32.mrf.mxu0  ;;  %v668_v10 = vadd.f32 %v667_v35, %v4342_v53 }
 0x125   : > { %v572_v52 = vadd.f32 %v571_v43, %v4335_v38  ;;  %v620_v54 = vpop.f32.mrf.mxu1  ;;  %v717_v38 = vadd.f32 %v716_v42, %v4345_v55  ;;  %v3261_v42 = vld [vmem:[#allocation2 + $0xc8] sm:$0xf] }
 0x126   : > { %v621_v1 = vadd.f32 %v620_v54, %v4337_v40  ;;  %v779_v27 = vmax.f32 %v668_v10, 0.0  ;;  %v3262_v50 = vor.u32 %v3856_v47, %v3261_v42 }
 0x127   : > { %v781_v3 = vmax.f32 %v572_v52, 0.0  ;;  %v780_v33 = vmax.f32 %v717_v38, 0.0  ;;  %v3501_v38 = vld [vmem:[#allocation2 + $0x2a8] sm:$0xf] }
 0x128   : > { %v782_v6 = vmax.f32 %v621_v1, 0.0  ;;  %1988 = vmatpush.bf16.msrb.mxu0 %v3262_v50  ;;  %v3884_v50 = vld [vmem:[#allocation2 + $0x1b4] sm:$0xf0] }
 0x129   : > { %v4487_v8 = vpack.c.bf16 %v781_v3, %v777_v51  ;;  %v3646_v51 = vor.u32 %v3952_v49, %v3645_v48  ;;  %v3373_v49 = vld [vmem:[#allocation2 + $0x1a8] sm:$0xf] }
 0x12a   : > { %v4490_v11 = vpack.c.bf16 %v782_v6, %v778_v59  ;;  %v3888_v59 = vld [vmem:[#allocation2 + $0x1d4] sm:$0xf0] }
 0x12b   : > { %v669_v15 = vpop.f32.mrf.mxu2  ;;  %1638 = vmatmul.bf16.gmra.mxu0 %v4487_v8  ;;  %2135 = vmatpush.bf16.msrb.mxu3 %v3646_v51  ;;  %v3390_v3 = vor.u32 %v3888_v59, %v3389_v58 }
 0x12c   : > { %v670_v40 = vadd.f32 %v669_v15, %v4342_v53  ;;  %v718_v19 = vpop.f32.mrf.mxu3  ;;  %1687 = vmatmul.bf16.gmra.mxu1 %v4490_v11  ;;  %v4509_v53 = vperm.slane %v4502_v36, 0  ;;  %v3916_v15 = vld [vmem:[#allocation2 + $0x2b4] sm:$0xf0] }
 0x12d   : > { %v719_v20 = vadd.f32 %v718_v19, %v4345_v55  ;;  %v3517_v55 = vld [vmem:[#allocation2 + $0x2c8] sm:$0xf]  ;;  %2037 = vmatpush.bf16.msrb.mxu1 %v3390_v3  ;;  %v3852_v19 = vld [vmem:[#allocation2 + $0xb4] sm:$0xf0] }
 0x12e   : > { %v783_v28 = vmax.f32 %v670_v40, 0.0  ;;  %v3518_v43 = vor.u32 %v3920_v39, %v3517_v55  ;;  %v3502_v40 = vor.u32 %v3916_v15, %v3501_v38  ;;  %v3485_v15 = vld [vmem:[#allocation2 + $0x288] sm:$0xf] }
 0x12f   : > { %v784_v34 = vmax.f32 %v719_v20, 0.0  ;;  %v3629_v20 = vld [vmem:[#allocation2 + $0x3a8] sm:$0xf] }
 0x130   : > { %v4497_v35 = vpack.c.bf16 %v783_v28, %v779_v27  ;;  %2086 = vmatpush.bf16.msrb.mxu2 %v3518_v43  ;;  %v3948_v27 = vld [vmem:[#allocation2 + $0x3b4] sm:$0xf0] }
 0x131   : > { %v4504_v37 = vpack.c.bf16 %v784_v34, %v780_v33  ;;  %v3246_v33 = vor.u32 %v3852_v19, %v3245_v16  ;;  %v3630_v34 = vor.u32 %v3948_v27, %v3629_v20  ;;  %v3912_v16 = vld [vmem:[#allocation2 + $0x294] sm:$0xf0]  ;;  %v3613_v27 = vld [vmem:[#allocation2 + $0x388] sm:$0xf] }
 0x132   : > { %1736 = vmatmul.bf16.gmra.mxu2 %v4497_v35  ;;  %v3486_v20 = vor.u32 %v3912_v16, %v3485_v15 }
 0x133   : > { %1785 = vmatmul.bf16.gmra.mxu3 %v4504_v37  ;;  %1989 = vmatpush.bf16.msrb.mxu0 %v3246_v33 }
 0x134   : > { %2087 = vmatpush.bf16.msrb.mxu2 %v3502_v40  ;;  %2136 = vmatpush.bf16.msrb.mxu3 %v3630_v34  ;;  %v3229_v40 = vld [vmem:[#allocation2 + $0x88] sm:$0xf] }
 0x138   : > { %v1604_v52 = vpop.f32.mrf.mxu0  ;;  %2088 = vmatpush.bf16.msrb.mxu2 %v3486_v20  ;;  %v3908_v20 = vld [vmem:[#allocation2 + $0x274] sm:$0xf0] }
 0x139   : > { %v1605_v54 = vadd.f32 %v1604_v52, %v4509_v53  ;;  %v1653_v56 = vpop.f32.mrf.mxu1  ;;  %v3374_v52 = vor.u32 %v3884_v50, %v3373_v49  ;;  %v3357_v50 = vld [vmem:[#allocation2 + $0x188] sm:$0xf] }
 0x13b   : > { %v1654_v1 = vadd.f32 %v1653_v56, %v1605_v54  ;;  %1799 = vmatmul.bf16.vlgmr.msra.gmra.mxu0 %v4347_v63  ;;  %2038 = vmatpush.bf16.msrb.mxu1 %v3374_v52  ;;  %v3880_v52 = vld [vmem:[#allocation2 + $0x194] sm:$0xf0] }
 0x13c   : > { %1848 = vmatmul.bf16.vlgmr.msra.gmra.mxu1 %v4350_v2 }
 0x140   : > { %v1606_v6 = vpop.f32.mrf.mxu0 }
 0x141   : > { %v1607_v10 = vadd.f32 %v1606_v6, %v4509_v53  ;;  %v1655_v13 = vpop.f32.mrf.mxu1 }
 0x142   : > { %1897 = vmatmul.bf16.vlgmr.msra.gmra.mxu2 %v4357_v17 }
 0x143   : > { %v1656_v14 = vadd.f32 %v1655_v13, %v1607_v10  ;;  %1946 = vmatmul.bf16.vlgmr.msra.gmra.mxu3 %v4359_v18 }
 0x145   : > { %v1702_v28 = vpop.f32.mrf.mxu2 }
 0x146   : > { %v1703_v55 = vadd.f32 %v1702_v28, %v1654_v1  ;;  %v1751_v39 = vpop.f32.mrf.mxu3  ;;  %v3944_v28 = vld [vmem:[#allocation2 + $0x394] sm:$0xf0] }
 0x148   : > { %v1752_v42 = vadd.f32 %v1751_v39, %v1703_v55  ;;  %v1609_v43 = vpop.f32.mrf.mxu0  ;;  %v3614_v55 = vor.u32 %v3944_v28, %v3613_v27  ;;  %v3844_v28 = vld [vmem:[#allocation2 + $0x74] sm:$0xf0] }
 0x149   : > { %v1610_v47 = vadd.f32 %v1609_v43, %v4509_v53  ;;  %v1658_v48 = vpop.f32.mrf.mxu1 }
 0x14a   : > { %v2379_v10 = vmax.f32 %v1752_v42, 0.0  ;;  %2137 = vmatpush.bf16.msrb.mxu3 %v3614_v55 }
 0x14b   : > { %v1659_v51 = vadd.f32 %v1658_v48, %v1610_v47  ;;  %1804 = vmatmul.bf16.gmra.mxu0 %v4367_v41 }
 0x14c   : > { %1853 = vmatmul.bf16.gmra.mxu1 %v4370_v44 }
 0x14d   : > { %v1704_v54 = vpop.f32.mrf.mxu2 }
 0x14e   : > { %v1705_v56 = vadd.f32 %v1704_v54, %v1656_v14  ;;  %v1753_v58 = vpop.f32.mrf.mxu3  ;;  %v3848_v14 = vld [vmem:[#allocation2 + $0x94] sm:$0xf0] }
 0x14f   : > { %v3230_v34 = vor.u32 %v3848_v14, %v3229_v40  ;;  %v3469_v40 = vld [vmem:[#allocation2 + $0x268] sm:$0xf] }
 0x150   : > { %v1754_v59 = vadd.f32 %v1753_v58, %v1705_v56  ;;  %v1611_v1 = vpop.f32.mrf.mxu0  ;;  %v3358_v56 = vor.u32 %v3880_v52, %v3357_v50  ;;  %v3213_v14 = vld [vmem:[#allocation2 + $0x68] sm:$0xf]  ;;  %v3470_v27 = vor.u32 %v3908_v20, %v3469_v40 }
 0x151   : > { %v1612_v3 = vadd.f32 %v1611_v1, %v4509_v53  ;;  %v1660_v6 = vpop.f32.mrf.mxu1  ;;  %1990 = vmatpush.bf16.msrb.mxu0 %v3230_v34 }
 0x152   : > { %v2383_v13 = vmax.f32 %v1754_v59, 0.0  ;;  %1902 = vmatmul.bf16.gmra.mxu2 %v4377_v61  ;;  %2039 = vmatpush.bf16.msrb.mxu1 %v3358_v56  ;;  %v3341_v56 = vld [vmem:[#allocation2 + $0x168] sm:$0xf] }
 0x153   : > { %v1661_v38 = vadd.f32 %v1660_v6, %v1612_v3  ;;  %1951 = vmatmul.bf16.gmra.mxu3 %v4379_v62  ;;  %2089 = vmatpush.bf16.msrb.mxu2 %v3470_v27  ;;  %v3453_v27 = vld [vmem:[#allocation2 + $0x248] sm:$0xf] }
 0x154   : > { %v4523_v19 = vpack.c.bf16 %v2383_v13, %v2379_v10 }
 0x155   : > { %v1707_v33 = vpop.f32.mrf.mxu2 }
 0x156   : > { %v1708_v39 = vadd.f32 %v1707_v33, %v1659_v51  ;;  %v1756_v42 = vpop.f32.mrf.mxu3  ;;  %v3597_v33 = vld [vmem:[#allocation2 + $0x368] sm:$0xf] }
 0x158   : > { %v1757_v43 = vadd.f32 %v1756_v42, %v1708_v39  ;;  %v1614_v47 = vpop.f32.mrf.mxu0  ;;  %v3214_v39 = vor.u32 %v3844_v28, %v3213_v14  ;;  %v3904_v28 = vld [vmem:[#allocation2 + $0x254] sm:$0xf0] }
 0x159   : > { %v1615_v48 = vadd.f32 %v1614_v47, %v4509_v53  ;;  %v1663_v49 = vpop.f32.mrf.mxu1 }
 0x15a   : > { %v2387_v13 = vmax.f32 %v1757_v43, 0.0  ;;  %1991 = vmatpush.bf16.msrb.mxu0 %v3214_v39  ;;  %v3581_v39 = vld [vmem:[#allocation2 + $0x348] sm:$0xf] }
 0x15b   : > { %v1664_v54 = vadd.f32 %v1663_v49, %v1615_v48  ;;  %1809 = vmatmul.bf16.gmra.mxu0 %v4387_v23 }
 0x15c   : > { %1858 = vmatmul.bf16.gmra.mxu1 %v4390_v26 }
 0x15d   : > { %v1709_v58 = vpop.f32.mrf.mxu2 }
 0x15e   : > { %v1710_v51 = vadd.f32 %v1709_v58, %v1661_v38  ;;  %v1758_v59 = vpop.f32.mrf.mxu3  ;;  %v3940_v38 = vld [vmem:[#allocation2 + $0x374] sm:$0xf0] }
 0x15f   : > { %v3598_v42 = vor.u32 %v3940_v38, %v3597_v33  ;;  %v3876_v58 = vld [vmem:[#allocation2 + $0x174] sm:$0xf0]  ;;  %v3197_v33 = vld [vmem:[#allocation2 + $0x48] sm:$0xf]  ;;  %v3454_v38 = vor.u32 %v3904_v28, %v3453_v27 }
 0x160   : > { %v1759_v1 = vadd.f32 %v1758_v59, %v1710_v51  ;;  %v1616_v3 = vpop.f32.mrf.mxu0  ;;  %v3342_v59 = vor.u32 %v3876_v58, %v3341_v56 }
 0x161   : > { %v1617_v6 = vadd.f32 %v1616_v3, %v4509_v53  ;;  %v1665_v10 = vpop.f32.mrf.mxu1  ;;  %2138 = vmatpush.bf16.msrb.mxu3 %v3598_v42  ;;  %2090 = vmatpush.bf16.msrb.mxu2 %v3454_v38 }
 0x162   : > { %v2391_v15 = vmax.f32 %v1759_v1, 0.0  ;;  %1907 = vmatmul.bf16.gmra.mxu2 %v4397_v45  ;;  %2040 = vmatpush.bf16.msrb.mxu1 %v3342_v59 }
 0x163   : > { %v1666_v16 = vadd.f32 %v1665_v10, %v1617_v6  ;;  %1956 = vmatmul.bf16.gmra.mxu3 %v4399_v46 }
 0x164   : > { %v4531_v34 = vpack.c.bf16 %v2391_v15, %v2387_v13 }
 0x165   : > { %v1712_v55 = vpop.f32.mrf.mxu2 }
 0x166   : > { %v1713_v47 = vadd.f32 %v1712_v55, %v1664_v54  ;;  %v1761_v43 = vpop.f32.mrf.mxu3  ;;  %v3840_v55 = vld [vmem:[#allocation2 + $0x54] sm:$0xf0] }
 0x168   : > { %v1762_v48 = vadd.f32 %v1761_v43, %v1713_v47  ;;  %v1619_v49 = vpop.f32.mrf.mxu0  ;;  %v3198_v43 = vor.u32 %v3840_v55, %v3197_v33  ;;  %v3437_v55 = vld [vmem:[#allocation2 + $0x228] sm:$0xf] }
 0x169   : > { %v1620_v50 = vadd.f32 %v1619_v49, %v4509_v53  ;;  %v1668_v52 = vpop.f32.mrf.mxu1 }
 0x16a   : > { %v2395_v40 = vmax.f32 %v1762_v48, 0.0  ;;  %1992 = vmatpush.bf16.msrb.mxu0 %v3198_v43  ;;  %v3836_v43 = vld [vmem:[#allocation2 + $0x34] sm:$0xf0] }
 0x16b   : > { %v1669_v51 = vadd.f32 %v1668_v52, %v1620_v50  ;;  %1814 = vmatmul.bf16.gmra.mxu0 %v4407_v9 }
 0x16c   : > { %1863 = vmatmul.bf16.gmra.mxu1 %v4410_v12 }
 0x16d   : > { %v1714_v1 = vpop.f32.mrf.mxu2 }
 0x16e   : > { %v1715_v54 = vadd.f32 %v1714_v1, %v1666_v16  ;;  %v1763_v3 = vpop.f32.mrf.mxu3  ;;  %v3936_v16 = vld [vmem:[#allocation2 + $0x354] sm:$0xf0]  ;;  %v3325_v1 = vld [vmem:[#allocation2 + $0x148] sm:$0xf] }
 0x16f   : > { %v3582_v49 = vor.u32 %v3936_v16, %v3581_v39  ;;  %v3900_v39 = vld [vmem:[#allocation2 + $0x234] sm:$0xf0]  ;;  %v3181_v16 = vld [vmem:[#allocation2 + $0x28] sm:$0xf] }
 0x170   : > { %v1764_v6 = vadd.f32 %v1763_v3, %v1715_v54  ;;  %v1621_v10 = vpop.f32.mrf.mxu0  ;;  %v3872_v54 = vld [vmem:[#allocation2 + $0x154] sm:$0xf0] }
 0x171   : > { %v1622_v13 = vadd.f32 %v1621_v10, %v4509_v53  ;;  %v1670_v15 = vpop.f32.mrf.mxu1  ;;  %2139 = vmatpush.bf16.msrb.mxu3 %v3582_v49  ;;  %v3565_v49 = vld [vmem:[#allocation2 + $0x328] sm:$0xf] }
 0x172   : > { %v2399_v20 = vmax.f32 %v1764_v6, 0.0  ;;  %1912 = vmatmul.bf16.gmra.mxu2 %v4417_v31  ;;  %v3326_v6 = vor.u32 %v3872_v54, %v3325_v1 }
 0x173   : > { %v1671_v14 = vadd.f32 %v1670_v15, %v1622_v13  ;;  %1961 = vmatmul.bf16.gmra.mxu3 %v4419_v32 }
 0x174   : > { %v4539_v42 = vpack.c.bf16 %v2399_v20, %v2395_v40  ;;  %2041 = vmatpush.bf16.msrb.mxu1 %v3326_v6 }
 0x175   : > { %v1717_v47 = vpop.f32.mrf.mxu2 }
 0x176   : > { %v1718_v50 = vadd.f32 %v1717_v47, %v1669_v51  ;;  %v1766_v48 = vpop.f32.mrf.mxu3  ;;  %v3438_v47 = vor.u32 %v3900_v39, %v3437_v55 }
 0x178   : > { %v1767_v52 = vadd.f32 %v1766_v48, %v1718_v50  ;;  %v1624_v56 = vpop.f32.mrf.mxu0  ;;  %2091 = vmatpush.bf16.msrb.mxu2 %v3438_v47 }
 0x179   : > { %v1625_v58 = vadd.f32 %v1624_v56, %v4509_v53  ;;  %v1673_v59 = vpop.f32.mrf.mxu1  ;;  %v3182_v56 = vor.u32 %v3836_v43, %v3181_v16 }
 0x17a   : > { %v2403_v28 = vmax.f32 %v1767_v52, 0.0 }
 0x17b   : > { %v1674_v3 = vadd.f32 %v1673_v59, %v1625_v58  ;;  %1819 = vmatmul.bf16.gmra.mxu0 %v4427_v0 }
 0x17c   : > { %1868 = vmatmul.bf16.gmra.mxu1 %v4430_v4  ;;  %1993 = vmatpush.bf16.msrb.mxu0 %v3182_v56 }
 0x17d   : > { %v1719_v10 = vpop.f32.mrf.mxu2 }
 0x17e   : > { %v1720_v51 = vadd.f32 %v1719_v10, %v1671_v14  ;;  %v1768_v13 = vpop.f32.mrf.mxu3  ;;  %v3932_v14 = vld [vmem:[#allocation2 + $0x334] sm:$0xf0] }
 0x17f   : > { %v3566_v58 = vor.u32 %v3932_v14, %v3565_v49  ;;  %v3421_v49 = vld [vmem:[#allocation2 + $0x208] sm:$0xf]  ;;  %v3896_v14 = vld [vmem:[#allocation2 + $0x214] sm:$0xf0] }
 0x180   : > { %v1769_v15 = vadd.f32 %v1768_v13, %v1720_v51  ;;  %v1626_v40 = vpop.f32.mrf.mxu0  ;;  %v3309_v51 = vld [vmem:[#allocation2 + $0x128] sm:$0xf]  ;;  %v3868_v13 = vld [vmem:[#allocation2 + $0x134] sm:$0xf0]  ;;  %v3422_v56 = vor.u32 %v3896_v14, %v3421_v49 }
 0x181   : > { %v1627_v20 = vadd.f32 %v1626_v40, %v4509_v53  ;;  %v1675_v27 = vpop.f32.mrf.mxu1  ;;  %2140 = vmatpush.bf16.msrb.mxu3 %v3566_v58  ;;  %v3310_v40 = vor.u32 %v3868_v13, %v3309_v51  ;;  %v3832_v58 = vld [vmem:[#allocation2 + $0x14] sm:$0xf0]  ;;  %v3293_v13 = vld [vmem:[#allocation2 + $0x108] sm:$0xf] }
 0x182   : > { %v2407_v33 = vmax.f32 %v1769_v15, 0.0  ;;  %1917 = vmatmul.bf16.gmra.mxu2 %v4437_v24 }
 0x183   : > { %v1676_v38 = vadd.f32 %v1675_v27, %v1627_v20  ;;  %1966 = vmatmul.bf16.gmra.mxu3 %v4439_v25  ;;  %2042 = vmatpush.bf16.msrb.mxu1 %v3310_v40  ;;  %v3864_v40 = vld [vmem:[#allocation2 + $0x114] sm:$0xf0] }
 0x184   : > { %v4547_v50 = vpack.c.bf16 %v2407_v33, %v2403_v28  ;;  %2092 = vmatpush.bf16.msrb.mxu2 %v3422_v56 }
 0x185   : > { %v1722_v48 = vpop.f32.mrf.mxu2 }
 0x186   : > { %v1723_v59 = vadd.f32 %v1722_v48, %v1674_v3  ;;  %v1771_v52 = vpop.f32.mrf.mxu3  ;;  %v3165_v48 = vld [vmem:[#allocation2 + $0x8] sm:$0xf] }
 0x188   : > { %v1772_v1 = vadd.f32 %v1771_v52, %v1723_v59  ;;  %v1629_v54 = vpop.f32.mrf.mxu0  ;;  %v3549_v59 = vld [vmem:[#allocation2 + $0x308] sm:$0xf] }
 0x189   : > { %v1630_v6 = vadd.f32 %v1629_v54, %v4509_v53  ;;  %v1678_v10 = vpop.f32.mrf.mxu1 }
 0x18a   : > { %v2411_v16 = vmax.f32 %v1772_v1, 0.0 }
 0x18b   : > { %v1679_v15 = vadd.f32 %v1678_v10, %v1630_v6  ;;  %1824 = vmatmul.bf16.gmra.mxu0 %v4447_v57  ;;  %v3166_v6 = vor.u32 %v3832_v58, %v3165_v48 }
 0x18c   : > { %1873 = vmatmul.bf16.gmra.mxu1 %v4450_v60 }
 0x18d   : > { %v1724_v20 = vpop.f32.mrf.mxu2  ;;  %1994 = vmatpush.bf16.msrb.mxu0 %v3166_v6  ;;  %v3858_v6 = vld [vmem:[#allocation2 + $0xec] sm:$0xf] }
 0x18e   : > { %v1725_v3 = vadd.f32 %v1724_v20, %v1676_v38  ;;  %v1773_v27 = vpop.f32.mrf.mxu3  ;;  %v3928_v38 = vld [vmem:[#allocation2 + $0x314] sm:$0xf0] }
 0x18f   : > { %v3550_v10 = vor.u32 %v3928_v38, %v3549_v59  ;;  %v3922_v38 = vld [vmem:[#allocation2 + $0x2ec] sm:$0xf] }
 0x190   : > { %v1774_v28 = vadd.f32 %v1773_v27, %v1725_v3  ;;  %v1631_v33 = vpop.f32.mrf.mxu0  ;;  %v3294_v27 = vor.u32 %v3864_v40, %v3293_v13 }
 0x191   : > { %v1632_v55 = vadd.f32 %v1631_v33, %v4509_v53  ;;  %v1680_v39 = vpop.f32.mrf.mxu1  ;;  %2141 = vmatpush.bf16.msrb.mxu3 %v3550_v10 }
 0x192   : > { %v2415_v47 = vmax.f32 %v1774_v28, 0.0  ;;  %1922 = vmatmul.bf16.gmra.mxu2 %v4457_v21  ;;  %2043 = vmatpush.bf16.msrb.mxu1 %v3294_v27 }
 0x193   : > { %v1681_v43 = vadd.f32 %v1680_v39, %v1632_v55  ;;  %1971 = vmatmul.bf16.gmra.mxu3 %v4459_v22 }
 0x194   : > { %v4555_v52 = vpack.c.bf16 %v2415_v47, %v2411_v16 }
 0x195   : > { %v1727_v54 = vpop.f32.mrf.mxu2 }
 0x196   : > { %4924 = vst [vmem:[#allocation5_spill] sm:$0xff] %v4555_v52  ;;  %v1728_v51 = vadd.f32 %v1727_v54, %v1679_v15  ;;  %v1776_v1 = vpop.f32.mrf.mxu3  ;;  %v3535_v54 = vld [vmem:[#allocation2 + $0x2f8] sm:$0xf0] }
 0x197   : > { %v3538_v10 = vor.u32 %v3922_v38, %v3535_v54 }
 0x198   : > { %v1777_v20 = vadd.f32 %v1776_v1, %v1728_v51  ;;  %v1634_v3 = vpop.f32.mrf.mxu0  ;;  %v3279_v51 = vld [vmem:[#allocation2 + $0xf8] sm:$0xf0]  ;;  %v3954_v1 = vld [vmem:[#allocation2 + $0x3ec] sm:$0xf] }
 0x199   : > { %v1635_v28 = vadd.f32 %v1634_v3, %v4509_v53  ;;  %v1683_v33 = vpop.f32.mrf.mxu1  ;;  %v3282_v3 = vor.u32 %v3858_v6, %v3279_v51  ;;  %2281 = vmatpush.bf16.msra.mxu2 %v3538_v10 }
 0x19a   : > { %v2419_v56 = vmax.f32 %v1777_v20, 0.0 }
 0x19b   : > { %v1684_v55 = vadd.f32 %v1683_v33, %v1635_v28  ;;  %1829 = vmatmul.bf16.gmra.mxu0 %v4467_v5 }
 0x19c   : > { %1878 = vmatmul.bf16.gmra.mxu1 %v4470_v7  ;;  %2183 = vmatpush.bf16.msra.mxu0 %v3282_v3  ;;  %v3918_v3 = vld [vmem:[#allocation2 + $0x2cc] sm:$0xf] }
 0x19d   : > { %v1729_v39 = vpop.f32.mrf.mxu2 }
 0x19e   : > { %v1730_v15 = vadd.f32 %v1729_v39, %v1681_v43  ;;  %v1778_v16 = vpop.f32.mrf.mxu3  ;;  %v3663_v43 = vld [vmem:[#allocation2 + $0x3f8] sm:$0xf0] }
 0x19f   : > { %v3666_v27 = vor.u32 %v3954_v1, %v3663_v43 }
 0x1a0   : > { %v1779_v47 = vadd.f32 %v1778_v16, %v1730_v15  ;;  %v1636_v49 = vpop.f32.mrf.mxu0 }
 0x1a1   : > { %v1637_v14 = vadd.f32 %v1636_v49, %v4509_v53  ;;  %v1685_v48 = vpop.f32.mrf.mxu1  ;;  %2330 = vmatpush.bf16.msra.mxu3 %v3666_v27  ;;  %v3407_v49 = vld [vmem:[#allocation2 + $0x1f8] sm:$0xf0] }
 0x1a2   : > { %v2423_v58 = vmax.f32 %v1779_v47, 0.0  ;;  %1927 = vmatmul.bf16.gmra.mxu2 %v4477_v29  ;;  %v3890_v47 = vld [vmem:[#allocation2 + $0x1ec] sm:$0xf]  ;;  %v3519_v27 = vld [vmem:[#allocation2 + $0x2d8] sm:$0xf0] }
 0x1a3   : > { %v1686_v59 = vadd.f32 %v1685_v48, %v1637_v14  ;;  %1976 = vmatmul.bf16.gmra.mxu3 %v4479_v30  ;;  %v3410_v48 = vor.u32 %v3890_v47, %v3407_v49 }
 0x1a4   : > { %v4563_v13 = vpack.c.bf16 %v2423_v58, %v2419_v56 }
 0x1a5   : > { %v1732_v40 = vpop.f32.mrf.mxu2  ;;  %2232 = vmatpush.bf16.msra.mxu1 %v3410_v48 }
 0x1a6   : > { %4925 = vst [vmem:[#allocation6_spill] sm:$0xff] %v4563_v13  ;;  %v1733_v28 = vadd.f32 %v1732_v40, %v1684_v55  ;;  %v1781_v20 = vpop.f32.mrf.mxu3  ;;  %v4572_v40 = vperm.slane %v4502_v36, 1 }
 0x1a8   : > { %v1782_v33 = vadd.f32 %v1781_v20, %v1733_v28  ;;  %v1639_v39 = vpop.f32.mrf.mxu0  ;;  %v3854_v28 = vld [vmem:[#allocation2 + $0xcc] sm:$0xf] }
 0x1a9   : > { %v1640_v15 = vadd.f32 %v1639_v39, %v4509_v53  ;;  %v1688_v16 = vpop.f32.mrf.mxu1  ;;  %v3522_v39 = vor.u32 %v3918_v3, %v3519_v27 }
 0x1aa   : > { %v2427_v51 = vmax.f32 %v1782_v33, 0.0 }
 0x1ab   : > { %v1689_v14 = vadd.f32 %v1688_v16, %v1640_v15  ;;  %1834 = vmatmul.bf16.gmra.mxu0 %v4487_v8  ;;  %v3263_v15 = vld [vmem:[#allocation2 + $0xd8] sm:$0xf0]  ;;  %2282 = vmatpush.bf16.msra.mxu2 %v3522_v39 }
 0x1ac   : > { %1883 = vmatmul.bf16.gmra.mxu1 %v4490_v11  ;;  %v3647_v16 = vld [vmem:[#allocation2 + $0x3d8] sm:$0xf0]  ;;  %v3266_v49 = vor.u32 %v3854_v28, %v3263_v15 }
 0x1ad   : > { %v1734_v56 = vpop.f32.mrf.mxu2 }
 0x1ae   : > { %v1735_v55 = vadd.f32 %v1734_v56, %v1686_v59  ;;  %v1783_v58 = vpop.f32.mrf.mxu3  ;;  %2184 = vmatpush.bf16.msra.mxu0 %v3266_v49 }
 0x1b0   : > { %v1784_v38 = vadd.f32 %v1783_v58, %v1735_v55  ;;  %v1641_v54 = vpop.f32.mrf.mxu0 }
 0x1b1   : > { %v1642_v6 = vadd.f32 %v1641_v54, %v4509_v53  ;;  %v1690_v10 = vpop.f32.mrf.mxu1  ;;  %v3950_v53 = vld [vmem:[#allocation2 + $0x3cc] sm:$0xf]  ;;  %v3391_v54 = vld [vmem:[#allocation2 + $0x1d8] sm:$0xf0] }
 0x1b2   : > { %v2431_v1 = vmax.f32 %v1784_v38, 0.0  ;;  %1932 = vmatmul.bf16.gmra.mxu2 %v4497_v35  ;;  %v3650_v48 = vor.u32 %v3950_v53, %v3647_v16  ;;  %v3886_v38 = vld [vmem:[#allocation2 + $0x1cc] sm:$0xf] }
 0x1b3   : > { %v1691_v43 = vadd.f32 %v1690_v10, %v1642_v6  ;;  %1981 = vmatmul.bf16.gmra.mxu3 %v4504_v37  ;;  %v3394_v10 = vor.u32 %v3886_v38, %v3391_v54  ;;  %v3914_v16 = vld [vmem:[#allocation2 + $0x2ac] sm:$0xf] }
 0x1b4   : > { %v4574_v59 = vpack.c.bf16 %v2431_v1, %v2427_v51  ;;  %2331 = vmatpush.bf16.msra.mxu3 %v3650_v48  ;;  %v3247_v48 = vld [vmem:[#allocation2 + $0xb8] sm:$0xf0] }
 0x1b5   : > { %v1737_v20 = vpop.f32.mrf.mxu2  ;;  %2233 = vmatpush.bf16.msra.mxu1 %v3394_v10 }
 0x1b6   : > { %4926 = vst [vmem:[#allocation7_spill] sm:$0xff] %v4574_v59  ;;  %v1738_v33 = vadd.f32 %v1737_v20, %v1689_v14  ;;  %v1786_v47 = vpop.f32.mrf.mxu3  ;;  %v3866_v59 = vld [vmem:[#allocation2 + $0x12c] sm:$0xf] }
 0x1b8   : > { %v1787_v56 = vadd.f32 %v1786_v47, %v1738_v33  ;;  %v1800_v55 = vpop.f32.mrf.mxu0  ;;  %v3503_v33 = vld [vmem:[#allocation2 + $0x2b8] sm:$0xf0]  ;;  %v3850_v47 = vld [vmem:[#allocation2 + $0xac] sm:$0xf] }
 0x1b9   : > { %v1801_v36 = vadd.f32 %v1800_v55, %v4572_v40  ;;  %v1849_v58 = vpop.f32.mrf.mxu1  ;;  %v3506_v49 = vor.u32 %v3914_v16, %v3503_v33  ;;  %v3946_v55 = vld [vmem:[#allocation2 + $0x3ac] sm:$0xf]  ;;  %v3250_v38 = vor.u32 %v3850_v47, %v3247_v48 }
 0x1ba   : > { %v2435_v39 = vmax.f32 %v1787_v56, 0.0 }
 0x1bb   : > { %v1850_v6 = vadd.f32 %v1849_v58, %v1801_v36  ;;  %1995 = vmatmul.bf16.vlgmr.msrb.gmra.mxu0 %v4347_v63  ;;  %2283 = vmatpush.bf16.msra.mxu2 %v3506_v49 }
 0x1bc   : > { %2044 = vmatmul.bf16.vlgmr.msrb.gmra.mxu1 %v4350_v2  ;;  %2185 = vmatpush.bf16.msra.mxu0 %v3250_v38  ;;  %v3910_v38 = vld [vmem:[#allocation2 + $0x28c] sm:$0xf] }
 0x1bd   : > { %v1739_v14 = vpop.f32.mrf.mxu2 }
 0x1be   : > { %v1740_v51 = vadd.f32 %v1739_v14, %v1691_v43  ;;  %v1788_v1 = vpop.f32.mrf.mxu3  ;;  %v3631_v43 = vld [vmem:[#allocation2 + $0x3b8] sm:$0xf0] }
 0x1bf   : > { %v3634_v54 = vor.u32 %v3946_v55, %v3631_v43 }
 0x1c0   : > { %v1789_v3 = vadd.f32 %v1788_v1, %v1740_v51  ;;  %v1802_v27 = vpop.f32.mrf.mxu0 }
 0x1c1   : > { %v1803_v28 = vadd.f32 %v1802_v27, %v4572_v40  ;;  %v1851_v20 = vpop.f32.mrf.mxu1  ;;  %2332 = vmatpush.bf16.msra.mxu3 %v3634_v54  ;;  %v3882_v27 = vld [vmem:[#allocation2 + $0x1ac] sm:$0xf]  ;;  %v3487_v54 = vld [vmem:[#allocation2 + $0x298] sm:$0xf0] }
 0x1c2   : > { %v2439_v15 = vmax.f32 %v1789_v3, 0.0  ;;  %2093 = vmatmul.bf16.vlgmr.msrb.gmra.mxu2 %v4357_v17 }
 0x1c3   : > { %v1852_v53 = vadd.f32 %v1851_v20, %v1803_v28  ;;  %2142 = vmatmul.bf16.vlgmr.msrb.gmra.mxu3 %v4359_v18  ;;  %v3375_v28 = vld [vmem:[#allocation2 + $0x1b8] sm:$0xf0] }
 0x1c4   : > { %v4582_v36 = vpack.c.bf16 %v2439_v15, %v2435_v39  ;;  %v3378_v39 = vor.u32 %v3882_v27, %v3375_v28 }
 0x1c5   : > { %v1898_v58 = vpop.f32.mrf.mxu2 }
 0x1c6   : > { %4927 = vst [vmem:[#allocation8_spill] sm:$0xff] %v4582_v36  ;;  %v1899_v10 = vadd.f32 %v1898_v58, %v1850_v6  ;;  %v1947_v56 = vpop.f32.mrf.mxu3  ;;  %2234 = vmatpush.bf16.msra.mxu1 %v3378_v39  ;;  %v3870_v36 = vld [vmem:[#allocation2 + $0x14c] sm:$0xf] }
 0x1c8   : > { %v1948_v14 = vadd.f32 %v1947_v56, %v1899_v10  ;;  %v1805_v51 = vpop.f32.mrf.mxu0  ;;  %v3846_v10 = vld [vmem:[#allocation2 + $0x8c] sm:$0xf] }
 0x1c9   : > { %v1806_v1 = vadd.f32 %v1805_v51, %v4572_v40  ;;  %v1854_v3 = vpop.f32.mrf.mxu1  ;;  %v3490_v51 = vor.u32 %v3910_v38, %v3487_v54 }
 0x1ca   : > { %v2380_v55 = vmax.f32 %v1948_v14, 0.0 }
 0x1cb   : > { %v1855_v20 = vadd.f32 %v1854_v3, %v1806_v1  ;;  %2000 = vmatmul.bf16.gmra.mxu0 %v4367_v41  ;;  %v3942_v1 = vld [vmem:[#allocation2 + $0x38c] sm:$0xf]  ;;  %v3615_v3 = vld [vmem:[#allocation2 + $0x398] sm:$0xf0]  ;;  %2284 = vmatpush.bf16.msra.mxu2 %v3490_v51 }
 0x1cc   : > { %2049 = vmatmul.bf16.gmra.mxu1 %v4370_v44  ;;  %v3618_v39 = vor.u32 %v3942_v1, %v3615_v3 }
 0x1cd   : > { %v1900_v15 = vpop.f32.mrf.mxu2 }
 0x1ce   : > { %v1901_v6 = vadd.f32 %v1900_v15, %v1852_v53  ;;  %v1949_v16 = vpop.f32.mrf.mxu3  ;;  %v3231_v53 = vld [vmem:[#allocation2 + $0x98] sm:$0xf0]  ;;  %2333 = vmatpush.bf16.msra.mxu3 %v3618_v39  ;;  %v3906_v39 = vld [vmem:[#allocation2 + $0x26c] sm:$0xf] }
 0x1cf   : > { %v3234_v28 = vor.u32 %v3846_v10, %v3231_v53 }
 0x1d0   : > { %v1950_v33 = vadd.f32 %v1949_v16, %v1901_v6  ;;  %v1807_v47 = vpop.f32.mrf.mxu0 }
 0x1d1   : > { %v1808_v49 = vadd.f32 %v1807_v47, %v4572_v40  ;;  %v1856_v48 = vpop.f32.mrf.mxu1  ;;  %2186 = vmatpush.bf16.msra.mxu0 %v3234_v28 }
 0x1d2   : > { %v2384_v43 = vmax.f32 %v1950_v33, 0.0  ;;  %2098 = vmatmul.bf16.gmra.mxu2 %v4377_v61 }
 0x1d3   : > { %v1857_v58 = vadd.f32 %v1856_v48, %v1808_v49  ;;  %2147 = vmatmul.bf16.gmra.mxu3 %v4379_v62  ;;  %v3878_v49 = vld [vmem:[#allocation2 + $0x18c] sm:$0xf]  ;;  %v3359_v48 = vld [vmem:[#allocation2 + $0x198] sm:$0xf0] }
 0x1d4   : > { %v4590_v56 = vpack.c.bf16 %v2384_v43, %v2380_v55  ;;  %v3362_v43 = vor.u32 %v3878_v49, %v3359_v48 }
 0x1d5   : > { %v1903_v27 = vpop.f32.mrf.mxu2 }
 0x1d6   : > { %v1904_v15 = vadd.f32 %v1903_v27, %v1855_v20  ;;  %v1952_v14 = vpop.f32.mrf.mxu3  ;;  %2235 = vmatpush.bf16.msra.mxu1 %v3362_v43 }
 0x1d8   : > { %v1953_v6 = vadd.f32 %v1952_v14, %v1904_v15  ;;  %v1810_v16 = vpop.f32.mrf.mxu0  ;;  %v3471_v15 = vld [vmem:[#allocation2 + $0x278] sm:$0xf0]  ;;  %v3842_v14 = vld [vmem:[#allocation2 + $0x6c] sm:$0xf] }
 0x1d9   : > { %v1811_v33 = vadd.f32 %v1810_v16, %v4572_v40  ;;  %v1859_v47 = vpop.f32.mrf.mxu1  ;;  %v3474_v16 = vor.u32 %v3906_v39, %v3471_v15  ;;  %v3343_v39 = vld [vmem:[#allocation2 + $0x178] sm:$0xf0] }
 0x1da   : > { %v2388_v3 = vmax.f32 %v1953_v6, 0.0 }
 0x1db   : > { %v1860_v55 = vadd.f32 %v1859_v47, %v1811_v33  ;;  %2005 = vmatmul.bf16.gmra.mxu0 %v4387_v23  ;;  %v3215_v33 = vld [vmem:[#allocation2 + $0x78] sm:$0xf0]  ;;  %v3938_v47 = vld [vmem:[#allocation2 + $0x36c] sm:$0xf]  ;;  %2285 = vmatpush.bf16.msra.mxu2 %v3474_v16 }
 0x1dc   : > { %2054 = vmatmul.bf16.gmra.mxu1 %v4390_v26  ;;  %v3218_v43 = vor.u32 %v3842_v14, %v3215_v33 }
 0x1dd   : > { %v1905_v38 = vpop.f32.mrf.mxu2 }
 0x1de   : > { %v1906_v20 = vadd.f32 %v1905_v38, %v1857_v58  ;;  %v1954_v54 = vpop.f32.mrf.mxu3  ;;  %v3599_v58 = vld [vmem:[#allocation2 + $0x378] sm:$0xf0]  ;;  %2187 = vmatpush.bf16.msra.mxu0 %v3218_v43 }
 0x1df   : > { %v3602_v38 = vor.u32 %v3938_v47, %v3599_v58 }
 0x1e0   : > { %v1955_v10 = vadd.f32 %v1954_v54, %v1906_v20  ;;  %v1812_v51 = vpop.f32.mrf.mxu0 }
 0x1e1   : > { %v1813_v53 = vadd.f32 %v1812_v51, %v4572_v40  ;;  %v1861_v1 = vpop.f32.mrf.mxu1  ;;  %2334 = vmatpush.bf16.msra.mxu3 %v3602_v38 }
 0x1e2   : > { %v2392_v27 = vmax.f32 %v1955_v10, 0.0  ;;  %2103 = vmatmul.bf16.gmra.mxu2 %v4397_v45 }
 0x1e3   : > { %v1862_v28 = vadd.f32 %v1861_v1, %v1813_v53  ;;  %2152 = vmatmul.bf16.gmra.mxu3 %v4399_v46  ;;  %v3874_v1 = vld [vmem:[#allocation2 + $0x16c] sm:$0xf] }
 0x1e4   : > { %v4598_v49 = vpack.c.bf16 %v2392_v27, %v2388_v3  ;;  %v3346_v3 = vor.u32 %v3874_v1, %v3343_v39  ;;  %v3934_v1 = vld [vmem:[#allocation2 + $0x34c] sm:$0xf] }
 0x1e5   : > { %v1908_v48 = vpop.f32.mrf.mxu2 }
 0x1e6   : > { %v1909_v20 = vadd.f32 %v1908_v48, %v1860_v55  ;;  %v1957_v6 = vpop.f32.mrf.mxu3  ;;  %2236 = vmatpush.bf16.msra.mxu1 %v3346_v3 }
 0x1e8   : > { %v1958_v54 = vadd.f32 %v1957_v6, %v1909_v20  ;;  %v1815_v10 = vpop.f32.mrf.mxu0  ;;  %v3902_v20 = vld [vmem:[#allocation2 + $0x24c] sm:$0xf]  ;;  %v3455_v6 = vld [vmem:[#allocation2 + $0x258] sm:$0xf0] }
 0x1e9   : > { %v1816_v51 = vadd.f32 %v1815_v10, %v4572_v40  ;;  %v1864_v53 = vpop.f32.mrf.mxu1  ;;  %v3838_v10 = vld [vmem:[#allocation2 + $0x4c] sm:$0xf] }
 0x1ea   : > { %v2396_v48 = vmax.f32 %v1958_v54, 0.0 }
 0x1eb   : > { %v1865_v15 = vadd.f32 %v1864_v53, %v1816_v51  ;;  %2010 = vmatmul.bf16.gmra.mxu0 %v4407_v9  ;;  %v3458_v51 = vor.u32 %v3902_v20, %v3455_v6  ;;  %v3199_v53 = vld [vmem:[#allocation2 + $0x58] sm:$0xf0] }
 0x1ec   : > { %2059 = vmatmul.bf16.gmra.mxu1 %v4410_v12  ;;  %v3327_v20 = vld [vmem:[#allocation2 + $0x158] sm:$0xf0] }
 0x1ed   : > { %v1910_v27 = vpop.f32.mrf.mxu2  ;;  %2286 = vmatpush.bf16.msra.mxu2 %v3458_v51 }
 0x1ee   : > { %v1911_v55 = vadd.f32 %v1910_v27, %v1862_v28  ;;  %v1959_v14 = vpop.f32.mrf.mxu3  ;;  %v3583_v28 = vld [vmem:[#allocation2 + $0x358] sm:$0xf0]  ;;  %v3202_v27 = vor.u32 %v3838_v10, %v3199_v53 }
 0x1f0   : > { %v1960_v16 = vadd.f32 %v1959_v14, %v1911_v55  ;;  %v1817_v33 = vpop.f32.mrf.mxu0  ;;  %v3586_v55 = vor.u32 %v3934_v1, %v3583_v28  ;;  %2188 = vmatpush.bf16.msra.mxu0 %v3202_v27 }
 0x1f1   : > { %v1818_v47 = vadd.f32 %v1817_v33, %v4572_v40  ;;  %v1866_v58 = vpop.f32.mrf.mxu1 }
 0x1f2   : > { %v2400_v43 = vmax.f32 %v1960_v16, 0.0  ;;  %2108 = vmatmul.bf16.gmra.mxu2 %v4417_v31  ;;  %2335 = vmatpush.bf16.msra.mxu3 %v3586_v55 }
 0x1f3   : > { %v1867_v38 = vadd.f32 %v1866_v58, %v1818_v47  ;;  %2157 = vmatmul.bf16.gmra.mxu3 %v4419_v32 }
 0x1f4   : > { %v4606_v39 = vpack.c.bf16 %v2400_v43, %v2396_v48  ;;  %v3330_v48 = vor.u32 %v3870_v36, %v3327_v20  ;;  %v3439_v36 = vld [vmem:[#allocation2 + $0x238] sm:$0xf0] }
 0x1f5   : > { %v1913_v3 = vpop.f32.mrf.mxu2 }
 0x1f6   : > { %v1914_v14 = vadd.f32 %v1913_v3, %v1865_v15  ;;  %v1962_v54 = vpop.f32.mrf.mxu3  ;;  %2237 = vmatpush.bf16.msra.mxu1 %v3330_v48 }
 0x1f8   : > { %v1963_v16 = vadd.f32 %v1962_v54, %v1914_v14  ;;  %v1820_v33 = vpop.f32.mrf.mxu0  ;;  %v3898_v14 = vld [vmem:[#allocation2 + $0x22c] sm:$0xf] }
 0x1f9   : > { %v1821_v47 = vadd.f32 %v1820_v33, %v4572_v40  ;;  %v1869_v58 = vpop.f32.mrf.mxu1  ;;  %v3834_v54 = vld [vmem:[#allocation2 + $0x2c] sm:$0xf]  ;;  %v3442_v33 = vor.u32 %v3898_v14, %v3439_v36  ;;  %v3311_v14 = vld [vmem:[#allocation2 + $0x138] sm:$0xf0] }
 0x1fa   : > { %v2404_v3 = vmax.f32 %v1963_v16, 0.0 }
 0x1fb   : > { %v1870_v6 = vadd.f32 %v1869_v58, %v1821_v47  ;;  %2015 = vmatmul.bf16.gmra.mxu0 %v4427_v0  ;;  %v3183_v47 = vld [vmem:[#allocation2 + $0x38] sm:$0xf0]  ;;  %v3930_v58 = vld [vmem:[#allocation2 + $0x32c] sm:$0xf]  ;;  %2287 = vmatpush.bf16.msra.mxu2 %v3442_v33 }
 0x1fc   : > { %2064 = vmatmul.bf16.gmra.mxu1 %v4430_v4 }
 0x1fd   : > { %v1915_v43 = vpop.f32.mrf.mxu2 }
 0x1fe   : > { %v1916_v15 = vadd.f32 %v1915_v43, %v1867_v38  ;;  %v1964_v10 = vpop.f32.mrf.mxu3  ;;  %v3567_v38 = vld [vmem:[#allocation2 + $0x338] sm:$0xf0]  ;;  %v3186_v43 = vor.u32 %v3834_v54, %v3183_v47 }
 0x200   : > { %v1965_v51 = vadd.f32 %v1964_v10, %v1916_v15  ;;  %v1822_v53 = vpop.f32.mrf.mxu0  ;;  %v3570_v15 = vor.u32 %v3930_v58, %v3567_v38  ;;  %2189 = vmatpush.bf16.msra.mxu0 %v3186_v43 }
 0x201   : > { %v1823_v1 = vadd.f32 %v1822_v53, %v4572_v40  ;;  %v1871_v28 = vpop.f32.mrf.mxu1 }
 0x202   : > { %v2408_v27 = vmax.f32 %v1965_v51, 0.0  ;;  %2113 = vmatmul.bf16.gmra.mxu2 %v4437_v24  ;;  %2336 = vmatpush.bf16.msra.mxu3 %v3570_v15 }
 0x203   : > { %v1872_v55 = vadd.f32 %v1871_v28, %v1823_v1  ;;  %2162 = vmatmul.bf16.gmra.mxu3 %v4439_v25 }
 0x204   : > { %v4614_v20 = vpack.c.bf16 %v2408_v27, %v2404_v3  ;;  %v3314_v3 = vor.u32 %v3866_v59, %v3311_v14  ;;  %v3423_v59 = vld [vmem:[#allocation2 + $0x218] sm:$0xf0] }
 0x205   : > { %v1918_v48 = vpop.f32.mrf.mxu2 }
 0x206   : > { %v1919_v10 = vadd.f32 %v1918_v48, %v1870_v6  ;;  %v1967_v16 = vpop.f32.mrf.mxu3  ;;  %2238 = vmatpush.bf16.msra.mxu1 %v3314_v3 }
 0x208   : > { %v1968_v51 = vadd.f32 %v1967_v16, %v1919_v10  ;;  %v1825_v53 = vpop.f32.mrf.mxu0  ;;  %v3894_v10 = vld [vmem:[#allocation2 + $0x20c] sm:$0xf] }
 0x209   : > { %v1826_v1 = vadd.f32 %v1825_v53, %v4572_v40  ;;  %v1874_v28 = vpop.f32.mrf.mxu1  ;;  %v3830_v16 = vld [vmem:[#allocation2 + $0xc] sm:$0xf]  ;;  %v3426_v53 = vor.u32 %v3894_v10, %v3423_v59 }
 0x20a   : > { %v2412_v48 = vmax.f32 %v1968_v51, 0.0 }
 0x20b   : > { %v1875_v36 = vadd.f32 %v1874_v28, %v1826_v1  ;;  %2020 = vmatmul.bf16.gmra.mxu0 %v4447_v57  ;;  %v3167_v1 = vld [vmem:[#allocation2 + $0x18] sm:$0xf0]  ;;  %v3926_v28 = vld [vmem:[#allocation2 + $0x30c] sm:$0xf]  ;;  %2288 = vmatpush.bf16.msra.mxu2 %v3426_v53 }
 0x20c   : > { %2069 = vmatmul.bf16.gmra.mxu1 %v4450_v60 }
 0x20d   : > { %v1920_v27 = vpop.f32.mrf.mxu2 }
 0x20e   : > { %v1921_v6 = vadd.f32 %v1920_v27, %v1872_v55  ;;  %v1969_v54 = vpop.f32.mrf.mxu3  ;;  %v3551_v55 = vld [vmem:[#allocation2 + $0x318] sm:$0xf0]  ;;  %v3170_v27 = vor.u32 %v3830_v16, %v3167_v1 }
 0x210   : > { %v1970_v33 = vadd.f32 %v1969_v54, %v1921_v6  ;;  %v1827_v47 = vpop.f32.mrf.mxu0  ;;  %v3554_v6 = vor.u32 %v3926_v28, %v3551_v55  ;;  %2190 = vmatpush.bf16.msra.mxu0 %v3170_v27 }
 0x211   : > { %v1828_v58 = vadd.f32 %v1827_v47, %v4572_v40  ;;  %v1876_v38 = vpop.f32.mrf.mxu1  ;;  %v3295_v47 = vld [vmem:[#allocation2 + $0x118] sm:$0xf0] }
 0x212   : > { %v2416_v43 = vmax.f32 %v1970_v33, 0.0  ;;  %2118 = vmatmul.bf16.gmra.mxu2 %v4457_v21  ;;  %2337 = vmatpush.bf16.msra.mxu3 %v3554_v6  ;;  %v3862_v33 = vld [vmem:[#allocation2 + $0x10c] sm:$0xf] }
 0x213   : > { %v1877_v15 = vadd.f32 %v1876_v38, %v1828_v58  ;;  %2167 = vmatmul.bf16.gmra.mxu3 %v4459_v22  ;;  %v3298_v13 = vor.u32 %v3862_v33, %v3295_v47 }
 0x214   : > { %v4622_v14 = vpack.c.bf16 %v2416_v43, %v2412_v48 }
 0x215   : > { %v1923_v3 = vpop.f32.mrf.mxu2  ;;  %2239 = vmatpush.bf16.msra.mxu1 %v3298_v13 }
 0x216   : > { %v1924_v54 = vadd.f32 %v1923_v3, %v1875_v36  ;;  %v1972_v51 = vpop.f32.mrf.mxu3 }
 0x218   : > { %v1973_v58 = vadd.f32 %v1972_v51, %v1924_v54  ;;  %v1830_v38 = vpop.f32.mrf.mxu0 }
 0x219   : > { %v1831_v10 = vadd.f32 %v1830_v38, %v4572_v40  ;;  %v1879_v59 = vpop.f32.mrf.mxu1 }
 0x21a   : > { %v2420_v55 = vmax.f32 %v1973_v58, 0.0 }
 0x21b   : > { %v1880_v52 = vadd.f32 %v1879_v59, %v1831_v10  ;;  %2025 = vmatmul.bf16.gmra.mxu0 %v4467_v5 }
 0x21c   : > { %2074 = vmatmul.bf16.gmra.mxu1 %v4470_v7 }
 0x21d   : > { %v1925_v48 = vpop.f32.mrf.mxu2 }
 0x21e   : > { %v1926_v36 = vadd.f32 %v1925_v48, %v1877_v15  ;;  %v1974_v43 = vpop.f32.mrf.mxu3 }
 0x220   : > { %v1975_v16 = vadd.f32 %v1974_v43, %v1926_v36  ;;  %v1832_v53 = vpop.f32.mrf.mxu0 }
 0x221   : > { %v1833_v1 = vadd.f32 %v1832_v53, %v4572_v40  ;;  %v1881_v28 = vpop.f32.mrf.mxu1 }
 0x222   : > { %v2424_v3 = vmax.f32 %v1975_v16, 0.0  ;;  %2123 = vmatmul.bf16.gmra.mxu2 %v4477_v29 }
 0x223   : > { %v1882_v27 = vadd.f32 %v1881_v28, %v1833_v1  ;;  %2172 = vmatmul.bf16.gmra.mxu3 %v4479_v30 }
 0x224   : > { %v4630_v13 = vpack.c.bf16 %v2424_v3, %v2420_v55  ;;  %v3980_v55 = vld [vmem:[%s4921_s5 + $0xb8] sm:$0xff] }
 0x225   : > { %v1928_v6 = vpop.f32.mrf.mxu2  ;;  %2833 = vmatpush.bf16.msrb.mxu2 %v3980_v55 }
 0x226   : > { %v1929_v54 = vadd.f32 %v1928_v6, %v1880_v52  ;;  %v1977_v51 = vpop.f32.mrf.mxu3  ;;  %v4646_v6 = vld [vmem:[%s4920_s4] sm:$0xf] }
 0x228   : > { %v1978_v33 = vadd.f32 %v1977_v51, %v1929_v54  ;;  %v1835_v15 = vpop.f32.mrf.mxu0 }
 0x229   : > { %v1836_v47 = vadd.f32 %v1835_v15, %v4572_v40  ;;  %v1884_v38 = vpop.f32.mrf.mxu1 }
 0x22a   : > { %v2428_v52 = vmax.f32 %v1978_v33, 0.0 }
 0x22b   : > { %v1885_v10 = vadd.f32 %v1884_v38, %v1836_v47  ;;  %2030 = vmatmul.bf16.gmra.mxu0 %v4487_v8 }
 0x22c   : > { %2079 = vmatmul.bf16.gmra.mxu1 %v4490_v11 }
 0x22d   : > { %v1930_v58 = vpop.f32.mrf.mxu2 }
 0x22e   : > { %v1931_v59 = vadd.f32 %v1930_v58, %v1882_v27  ;;  %v1979_v48 = vpop.f32.mrf.mxu3  ;;  %v3964_v58 = vld [vmem:[%s4921_s5 + $0x38] sm:$0xff] }
 0x22f   : > { %2735 = vmatpush.bf16.msrb.mxu0 %v3964_v58 }
 0x230   : > { %v1980_v36 = vadd.f32 %v1979_v48, %v1931_v59  ;;  %v1837_v43 = vpop.f32.mrf.mxu0  ;;  %v3988_v59 = vld [vmem:[%s4921_s5 + $0xf8] sm:$0xff] }
 0x231   : > { %v1838_v16 = vadd.f32 %v1837_v43, %v4572_v40  ;;  %v1886_v53 = vpop.f32.mrf.mxu1  ;;  %v4649_v40 = vperm.slane %v4646_v6, 2  ;;  %v3972_v48 = vld [vmem:[%s4921_s5 + $0x78] sm:$0xff]  ;;  %2882 = vmatpush.bf16.msrb.mxu3 %v3988_v59 }
 0x232   : > { %v2432_v1 = vmax.f32 %v1980_v36, 0.0  ;;  %2128 = vmatmul.bf16.gmra.mxu2 %v4497_v35  ;;  %2784 = vmatpush.bf16.msrb.mxu1 %v3972_v48  ;;  %v3971_v48 = vld [vmem:[%s4921_s5 + $0x70] sm:$0xff] }
 0x233   : > { %v1887_v28 = vadd.f32 %v1886_v53, %v1838_v16  ;;  %2177 = vmatmul.bf16.gmra.mxu3 %v4504_v37 }
 0x234   : > { %v4641_v3 = vpack.c.bf16 %v2432_v1, %v2428_v52 }
 0x235   : > { %v1933_v27 = vpop.f32.mrf.mxu2 }
 0x236   : > { %v1934_v54 = vadd.f32 %v1933_v27, %v1885_v10  ;;  %v1982_v51 = vpop.f32.mrf.mxu3  ;;  %2785 = vmatpush.bf16.msrb.mxu1 %v3971_v48 }
 0x238   : > { %v1983_v33 = vadd.f32 %v1982_v51, %v1934_v54  ;;  %v1996_v15 = vpop.f32.mrf.mxu0 }
 0x239   : > { %v1997_v47 = vadd.f32 %v1996_v15, %v4649_v40  ;;  %v2045_v38 = vpop.f32.mrf.mxu1 }
 0x23a   : > { %v2436_v27 = vmax.f32 %v1983_v33, 0.0 }
 0x23b   : > { %v2046_v10 = vadd.f32 %v2045_v38, %v1997_v47  ;;  %2191 = vmatmul.bf16.vlgmr.msra.gmra.mxu0 %v4347_v63  ;;  %v3979_v63 = vld [vmem:[%s4921_s5 + $0xb0] sm:$0xff] }
 0x23c   : > { %2240 = vmatmul.bf16.vlgmr.msra.gmra.mxu1 %v4350_v2  ;;  %2834 = vmatpush.bf16.msrb.mxu2 %v3979_v63 }
 0x23d   : > { %v1935_v36 = vpop.f32.mrf.mxu2 }
 0x23e   : > { %v1936_v43 = vadd.f32 %v1935_v36, %v1887_v28  ;;  %v1984_v16 = vpop.f32.mrf.mxu3 }
 0x240   : > { %v1985_v53 = vadd.f32 %v1984_v16, %v1936_v43  ;;  %v1998_v52 = vpop.f32.mrf.mxu0 }
 0x241   : > { %v1999_v1 = vadd.f32 %v1998_v52, %v4649_v40  ;;  %v2047_v55 = vpop.f32.mrf.mxu1 }
 0x242   : > { %v2440_v54 = vmax.f32 %v1985_v53, 0.0  ;;  %2289 = vmatmul.bf16.vlgmr.msra.gmra.mxu2 %v4357_v17  ;;  %v3963_v17 = vld [vmem:[%s4921_s5 + $0x30] sm:$0xff] }
 0x243   : > { %v2048_v51 = vadd.f32 %v2047_v55, %v1999_v1  ;;  %2338 = vmatmul.bf16.vlgmr.msra.gmra.mxu3 %v4359_v18  ;;  %v3987_v18 = vld [vmem:[%s4921_s5 + $0xf0] sm:$0xff]  ;;  %2736 = vmatpush.bf16.msrb.mxu0 %v3963_v17 }
 0x244   : > { %v4669_v2 = vpack.c.bf16 %v2440_v54, %v2436_v27  ;;  %2883 = vmatpush.bf16.msrb.mxu3 %v3987_v18 }
 0x245   : > { %v2094_v28 = vpop.f32.mrf.mxu2 }
 0x246   : > { %v2095_v15 = vadd.f32 %v2094_v28, %v2046_v10  ;;  %v2143_v47 = vpop.f32.mrf.mxu3 }
 0x248   : > { %v2144_v38 = vadd.f32 %v2143_v47, %v2095_v15  ;;  %v2001_v58 = vpop.f32.mrf.mxu0 }
 0x249   : > { %v2002_v33 = vadd.f32 %v2001_v58, %v4649_v40  ;;  %v2050_v59 = vpop.f32.mrf.mxu1 }
 0x24a   : > { %v2381_v27 = vmax.f32 %v2144_v38, 0.0 }
 0x24b   : > { %v2051_v36 = vadd.f32 %v2050_v59, %v2002_v33  ;;  %2196 = vmatmul.bf16.gmra.mxu0 %v4367_v41  ;;  %v3978_v41 = vld [vmem:[%s4921_s5 + $0xa8] sm:$0xff] }
 0x24c   : > { %2245 = vmatmul.bf16.gmra.mxu1 %v4370_v44  ;;  %2835 = vmatpush.bf16.msrb.mxu2 %v3978_v41  ;;  %v3970_v59 = vld [vmem:[%s4921_s5 + $0x68] sm:$0xff] }
 0x24d   : > { %v2096_v10 = vpop.f32.mrf.mxu2  ;;  %2786 = vmatpush.bf16.msrb.mxu1 %v3970_v59 }
 0x24e   : > { %v2097_v43 = vadd.f32 %v2096_v10, %v2048_v51  ;;  %v2145_v16 = vpop.f32.mrf.mxu3 }
 0x250   : > { %v2146_v53 = vadd.f32 %v2145_v16, %v2097_v43  ;;  %v2003_v52 = vpop.f32.mrf.mxu0 }
 0x251   : > { %v2004_v1 = vadd.f32 %v2003_v52, %v4649_v40  ;;  %v2052_v55 = vpop.f32.mrf.mxu1 }
 0x252   : > { %v2385_v54 = vmax.f32 %v2146_v53, 0.0  ;;  %2294 = vmatmul.bf16.gmra.mxu2 %v4377_v61  ;;  %v3962_v61 = vld [vmem:[%s4921_s5 + $0x28] sm:$0xff] }
 0x253   : > { %v2053_v63 = vadd.f32 %v2052_v55, %v2004_v1  ;;  %2343 = vmatmul.bf16.gmra.mxu3 %v4379_v62  ;;  %v3986_v62 = vld [vmem:[%s4921_s5 + $0xe8] sm:$0xff]  ;;  %2737 = vmatpush.bf16.msrb.mxu0 %v3962_v61 }
 0x254   : > { %v4689_v44 = vpack.c.bf16 %v2385_v54, %v2381_v27  ;;  %2884 = vmatpush.bf16.msrb.mxu3 %v3986_v62 }
 0x255   : > { %v2099_v51 = vpop.f32.mrf.mxu2 }
 0x256   : > { %v2100_v28 = vadd.f32 %v2099_v51, %v2051_v36  ;;  %v2148_v15 = vpop.f32.mrf.mxu3 }
 0x258   : > { %v2149_v47 = vadd.f32 %v2148_v15, %v2100_v28  ;;  %v2006_v58 = vpop.f32.mrf.mxu0 }
 0x259   : > { %v2007_v38 = vadd.f32 %v2006_v58, %v4649_v40  ;;  %v2055_v33 = vpop.f32.mrf.mxu1 }
 0x25a   : > { %v2389_v52 = vmax.f32 %v2149_v47, 0.0  ;;  %v3969_v47 = vld [vmem:[%s4921_s5 + $0x60] sm:$0xff] }
 0x25b   : > { %v2056_v17 = vadd.f32 %v2055_v33, %v2007_v38  ;;  %2201 = vmatmul.bf16.gmra.mxu0 %v4387_v23  ;;  %v3977_v23 = vld [vmem:[%s4921_s5 + $0xa0] sm:$0xff]  ;;  %2787 = vmatpush.bf16.msrb.mxu1 %v3969_v47 }
 0x25c   : > { %2250 = vmatmul.bf16.gmra.mxu1 %v4390_v26  ;;  %2836 = vmatpush.bf16.msrb.mxu2 %v3977_v23 }
 0x25d   : > { %v2101_v18 = vpop.f32.mrf.mxu2 }
 0x25e   : > { %v2102_v48 = vadd.f32 %v2101_v18, %v2053_v63  ;;  %v2150_v36 = vpop.f32.mrf.mxu3 }
 0x260   : > { %v2151_v10 = vadd.f32 %v2150_v36, %v2102_v48  ;;  %v2008_v43 = vpop.f32.mrf.mxu0 }
 0x261   : > { %v2009_v16 = vadd.f32 %v2008_v43, %v4649_v40  ;;  %v2057_v53 = vpop.f32.mrf.mxu1 }
 0x262   : > { %v2393_v1 = vmax.f32 %v2151_v10, 0.0  ;;  %2299 = vmatmul.bf16.gmra.mxu2 %v4397_v45  ;;  %v3961_v45 = vld [vmem:[%s4921_s5 + $0x20] sm:$0xff] }
 0x263   : > { %v2058_v55 = vadd.f32 %v2057_v53, %v2009_v16  ;;  %2348 = vmatmul.bf16.gmra.mxu3 %v4399_v46  ;;  %v3985_v46 = vld [vmem:[%s4921_s5 + $0xe0] sm:$0xff]  ;;  %2738 = vmatpush.bf16.msrb.mxu0 %v3961_v45 }
 0x264   : > { %v4709_v26 = vpack.c.bf16 %v2393_v1, %v2389_v52  ;;  %2885 = vmatpush.bf16.msrb.mxu3 %v3985_v46 }
 0x265   : > { %v2104_v27 = vpop.f32.mrf.mxu2 }
 0x266   : > { %v2105_v54 = vadd.f32 %v2104_v27, %v2056_v17  ;;  %v2153_v63 = vpop.f32.mrf.mxu3  ;;  %v3968_v27 = vld [vmem:[%s4921_s5 + $0x58] sm:$0xff] }
 0x267   : > { %2788 = vmatpush.bf16.msrb.mxu1 %v3968_v27  ;;  %v3966_v27 = vld [vmem:[%s4921_s5 + $0x48] sm:$0xff] }
 0x268   : > { %v2154_v41 = vadd.f32 %v2153_v63, %v2105_v54  ;;  %v2011_v51 = vpop.f32.mrf.mxu0 }
 0x269   : > { %v2012_v28 = vadd.f32 %v2011_v51, %v4649_v40  ;;  %v2060_v15 = vpop.f32.mrf.mxu1 }
 0x26a   : > { %v2397_v48 = vmax.f32 %v2154_v41, 0.0 }
 0x26b   : > { %v2061_v58 = vadd.f32 %v2060_v15, %v2012_v28  ;;  %2206 = vmatmul.bf16.gmra.mxu0 %v4407_v9  ;;  %v3976_v9 = vld [vmem:[%s4921_s5 + $0x98] sm:$0xff] }
 0x26c   : > { %2255 = vmatmul.bf16.gmra.mxu1 %v4410_v12  ;;  %2837 = vmatpush.bf16.msrb.mxu2 %v3976_v9 }
 0x26d   : > { %v2106_v38 = vpop.f32.mrf.mxu2 }
 0x26e   : > { %v2107_v33 = vadd.f32 %v2106_v38, %v2058_v55  ;;  %v2155_v61 = vpop.f32.mrf.mxu3 }
 0x270   : > { %v2156_v62 = vadd.f32 %v2155_v61, %v2107_v33  ;;  %v2013_v59 = vpop.f32.mrf.mxu0 }
 0x271   : > { %v2014_v17 = vadd.f32 %v2013_v59, %v4649_v40  ;;  %v2062_v18 = vpop.f32.mrf.mxu1 }
 0x272   : > { %v2401_v36 = vmax.f32 %v2156_v62, 0.0  ;;  %2304 = vmatmul.bf16.gmra.mxu2 %v4417_v31  ;;  %v3960_v31 = vld [vmem:[%s4921_s5 + $0x18] sm:$0xff] }
 0x273   : > { %v2063_v10 = vadd.f32 %v2062_v18, %v2014_v17  ;;  %2353 = vmatmul.bf16.gmra.mxu3 %v4419_v32  ;;  %v3984_v32 = vld [vmem:[%s4921_s5 + $0xd8] sm:$0xff]  ;;  %2739 = vmatpush.bf16.msrb.mxu0 %v3960_v31 }
 0x274   : > { %v4729_v12 = vpack.c.bf16 %v2401_v36, %v2397_v48  ;;  %2886 = vmatpush.bf16.msrb.mxu3 %v3984_v32  ;;  %v3967_v36 = vld [vmem:[%s4921_s5 + $0x50] sm:$0xff] }
 0x275   : > { %v2109_v43 = vpop.f32.mrf.mxu2  ;;  %2789 = vmatpush.bf16.msrb.mxu1 %v3967_v36 }
 0x276   : > { %v2110_v16 = vadd.f32 %v2109_v43, %v2061_v58  ;;  %v2158_v53 = vpop.f32.mrf.mxu3 }
 0x278   : > { %v2159_v52 = vadd.f32 %v2158_v53, %v2110_v16  ;;  %v2016_v1 = vpop.f32.mrf.mxu0 }
 0x279   : > { %v2017_v55 = vadd.f32 %v2016_v1, %v4649_v40  ;;  %v2065_v23 = vpop.f32.mrf.mxu1  ;;  %2790 = vmatpush.bf16.msrb.mxu1 %v3966_v27 }
 0x27a   : > { %v2405_v47 = vmax.f32 %v2159_v52, 0.0 }
 0x27b   : > { %v2066_v54 = vadd.f32 %v2065_v23, %v2017_v55  ;;  %2211 = vmatmul.bf16.gmra.mxu0 %v4427_v0  ;;  %v3975_v0 = vld [vmem:[%s4921_s5 + $0x90] sm:$0xff] }
 0x27c   : > { %2260 = vmatmul.bf16.gmra.mxu1 %v4430_v4  ;;  %2838 = vmatpush.bf16.msrb.mxu2 %v3975_v0 }
 0x27d   : > { %v2111_v63 = vpop.f32.mrf.mxu2 }
 0x27e   : > { %v2112_v41 = vadd.f32 %v2111_v63, %v2063_v10  ;;  %v2160_v51 = vpop.f32.mrf.mxu3 }
 0x280   : > { %v2161_v28 = vadd.f32 %v2160_v51, %v2112_v41  ;;  %v2018_v15 = vpop.f32.mrf.mxu0 }
 0x281   : > { %v2019_v45 = vadd.f32 %v2018_v15, %v4649_v40  ;;  %v2067_v46 = vpop.f32.mrf.mxu1  ;;  %v3965_v15 = vld [vmem:[%s4921_s5 + $0x40] sm:$0xff] }
 0x282   : > { %v2409_v58 = vmax.f32 %v2161_v28, 0.0  ;;  %2309 = vmatmul.bf16.gmra.mxu2 %v4437_v24  ;;  %v3959_v24 = vld [vmem:[%s4921_s5 + $0x10] sm:$0xff]  ;;  %v3957_v28 = vld [vmem:[%s4921_s5] sm:$0xff]  ;;  %2791 = vmatpush.bf16.msrb.mxu1 %v3965_v15 }
 0x283   : > { %v2068_v38 = vadd.f32 %v2067_v46, %v2019_v45  ;;  %2358 = vmatmul.bf16.gmra.mxu3 %v4439_v25  ;;  %v3983_v25 = vld [vmem:[%s4921_s5 + $0xd0] sm:$0xff]  ;;  %2740 = vmatpush.bf16.msrb.mxu0 %v3959_v24 }
 0x284   : > { %v4749_v4 = vpack.c.bf16 %v2409_v58, %v2405_v47  ;;  %2887 = vmatpush.bf16.msrb.mxu3 %v3983_v25  ;;  %v3982_v47 = vld [vmem:[%s4921_s5 + $0xc8] sm:$0xff] }
 0x285   : > { %v2114_v33 = vpop.f32.mrf.mxu2 }
 0x286   : > { %v2115_v61 = vadd.f32 %v2114_v33, %v2066_v54  ;;  %v2163_v62 = vpop.f32.mrf.mxu3 }
 0x288   : > { %v2164_v59 = vadd.f32 %v2163_v62, %v2115_v61  ;;  %v2021_v17 = vpop.f32.mrf.mxu0  ;;  %2888 = vmatpush.bf16.msrb.mxu3 %v3982_v47  ;;  %v3973_v61 = vld [vmem:[%s4921_s5 + $0x80] sm:$0xff] }
 0x289   : > { %v2022_v18 = vadd.f32 %v2021_v17, %v4649_v40  ;;  %v2070_v48 = vpop.f32.mrf.mxu1 }
 0x28a   : > { %v2413_v23 = vmax.f32 %v2164_v59, 0.0 }
 0x28b   : > { %v2071_v10 = vadd.f32 %v2070_v48, %v2022_v18  ;;  %2216 = vmatmul.bf16.gmra.mxu0 %v4447_v57  ;;  %v3974_v57 = vld [vmem:[%s4921_s5 + $0x88] sm:$0xff] }
 0x28c   : > { %2265 = vmatmul.bf16.gmra.mxu1 %v4450_v60  ;;  %v3958_v60 = vld [vmem:[%s4921_s5 + $0x8] sm:$0xff]  ;;  %2839 = vmatpush.bf16.msrb.mxu2 %v3974_v57 }
 0x28d   : > { %v2116_v9 = vpop.f32.mrf.mxu2  ;;  %2741 = vmatpush.bf16.msrb.mxu0 %v3958_v60 }
 0x28e   : > { %v2117_v43 = vadd.f32 %v2116_v9, %v2068_v38  ;;  %v2165_v16 = vpop.f32.mrf.mxu3 }
 0x290   : > { %v2166_v53 = vadd.f32 %v2165_v16, %v2117_v43  ;;  %v2023_v52 = vpop.f32.mrf.mxu0  ;;  %2840 = vmatpush.bf16.msrb.mxu2 %v3973_v61 }
 0x291   : > { %v2024_v1 = vadd.f32 %v2023_v52, %v4649_v40  ;;  %v2072_v55 = vpop.f32.mrf.mxu1  ;;  %2742 = vmatpush.bf16.msrb.mxu0 %v3957_v28  ;;  %v3981_v52 = vld [vmem:[%s4921_s5 + $0xc0] sm:$0xff] }
 0x292   : > { %v2417_v31 = vmax.f32 %v2166_v53, 0.0  ;;  %2314 = vmatmul.bf16.gmra.mxu2 %v4457_v21  ;;  %2889 = vmatpush.bf16.msrb.mxu3 %v3981_v52 }
 0x293   : > { %v2073_v32 = vadd.f32 %v2072_v55, %v2024_v1  ;;  %2363 = vmatmul.bf16.gmra.mxu3 %v4459_v22 }
 0x294   : > { %v4775_v54 = vpack.c.bf16 %v2417_v31, %v2413_v23 }
 0x295   : > { %v2119_v63 = vpop.f32.mrf.mxu2 }
 0x296   : > { %v2120_v21 = vadd.f32 %v2119_v63, %v2071_v10  ;;  %v2168_v41 = vpop.f32.mrf.mxu3 }
 0x298   : > { %v2169_v22 = vadd.f32 %v2168_v41, %v2120_v21  ;;  %v2026_v51 = vpop.f32.mrf.mxu0 }
 0x299   : > { %v2027_v45 = vadd.f32 %v2026_v51, %v4649_v40  ;;  %v2075_v46 = vpop.f32.mrf.mxu1 }
 0x29a   : > { %v2421_v48 = vmax.f32 %v2169_v22, 0.0 }
 0x29b   : > { %v2076_v58 = vadd.f32 %v2075_v46, %v2027_v45  ;;  %2221 = vmatmul.bf16.gmra.mxu0 %v4467_v5 }
 0x29c   : > { %2270 = vmatmul.bf16.gmra.mxu1 %v4470_v7 }
 0x29d   : > { %v2121_v38 = vpop.f32.mrf.mxu2 }
 0x29e   : > { %v2122_v0 = vadd.f32 %v2121_v38, %v2073_v32  ;;  %v2170_v33 = vpop.f32.mrf.mxu3 }
 0x2a0   : > { %v2171_v62 = vadd.f32 %v2170_v33, %v2122_v0  ;;  %v2028_v59 = vpop.f32.mrf.mxu0 }
 0x2a1   : > { %v2029_v17 = vadd.f32 %v2028_v59, %v4649_v40  ;;  %v2077_v18 = vpop.f32.mrf.mxu1 }
 0x2a2   : > { %v2425_v24 = vmax.f32 %v2171_v62, 0.0  ;;  %2319 = vmatmul.bf16.gmra.mxu2 %v4477_v29 }
 0x2a3   : > { %v2078_v5 = vadd.f32 %v2077_v18, %v2029_v17  ;;  %2368 = vmatmul.bf16.gmra.mxu3 %v4479_v30 }
 0x2a4   : > { %v4795_v7 = vpack.c.bf16 %v2425_v24, %v2421_v48 }
 0x2a5   : > { %v2124_v25 = vpop.f32.mrf.mxu2 }
 0x2a6   : > { %v2125_v36 = vadd.f32 %v2124_v25, %v2076_v58  ;;  %v2173_v10 = vpop.f32.mrf.mxu3 }
 0x2a8   : > { %v2174_v9 = vadd.f32 %v2173_v10, %v2125_v36  ;;  %v2031_v43 = vpop.f32.mrf.mxu0 }
 0x2a9   : > { %v2032_v16 = vadd.f32 %v2031_v43, %v4649_v40  ;;  %v2080_v53 = vpop.f32.mrf.mxu1 }
 0x2aa   : > { %v2429_v60 = vmax.f32 %v2174_v9, 0.0 }
 0x2ab   : > { %v2081_v1 = vadd.f32 %v2080_v53, %v2032_v16  ;;  %2226 = vmatmul.bf16.gmra.mxu0 %v4487_v8 }
 0x2ac   : > { %2275 = vmatmul.bf16.gmra.mxu1 %v4490_v11 }
 0x2ad   : > { %v2126_v29 = vpop.f32.mrf.mxu2 }
 0x2ae   : > { %v2127_v30 = vadd.f32 %v2126_v29, %v2078_v5  ;;  %v2175_v55 = vpop.f32.mrf.mxu3 }
 0x2b0   : > { %v2176_v23 = vadd.f32 %v2175_v55, %v2127_v30  ;;  %v2033_v31 = vpop.f32.mrf.mxu0 }
 0x2b1   : > { %v2034_v32 = vadd.f32 %v2033_v31, %v4649_v40  ;;  %v2082_v57 = vpop.f32.mrf.mxu1 }
 0x2b2   : > { %v2433_v27 = vmax.f32 %v2176_v23, 0.0  ;;  %2324 = vmatmul.bf16.gmra.mxu2 %v4497_v35  ;;  %v4811_v35 = vperm.slane %v4646_v6, 3 }
 0x2b3   : > { %v2083_v63 = vadd.f32 %v2082_v57, %v2034_v32  ;;  %2373 = vmatmul.bf16.gmra.mxu3 %v4504_v37 }
 0x2b4   : > { %v4806_v21 = vpack.c.bf16 %v2433_v27, %v2429_v60 }
 0x2b5   : > { %v2129_v8 = vpop.f32.mrf.mxu2 }
 0x2b6   : > { %v2130_v11 = vadd.f32 %v2129_v8, %v2081_v1  ;;  %v2178_v41 = vpop.f32.mrf.mxu3 }
 0x2b8   : > { %v2179_v22 = vadd.f32 %v2178_v41, %v2130_v11  ;;  %v2192_v51 = vpop.f32.mrf.mxu0 }
 0x2b9   : > { %v2241_v28 = vpop.f32.mrf.mxu1  ;;  %v2193_v0 = vadd.f32 %v2192_v51, %v4811_v35 }
 0x2ba   : > { %v2437_v58 = vmax.f32 %v2179_v22, 0.0 }
 0x2bb   : > { %2743 = vmatmul.bf16.vlgmr.msrb.gmra.mxu0 %v4523_v19 }
 0x2bc   : > { %2792 = vmatmul.bf16.vlgmr.msrb.gmra.mxu1 %v4590_v56  ;;  %v2242_v56 = vadd.f32 %v2241_v28, %v2193_v0 }
 0x2bd   : > { %v2131_v40 = vpop.f32.mrf.mxu2 }
 0x2be   : > { %v2132_v15 = vadd.f32 %v2131_v40, %v2083_v63  ;;  %v2180_v45 = vpop.f32.mrf.mxu3 }
 0x2c0   : > { %v2181_v46 = vadd.f32 %v2180_v45, %v2132_v15  ;;  %v2194_v37 = vpop.f32.mrf.mxu0 }
 0x2c1   : > { %v2243_v47 = vpop.f32.mrf.mxu1  ;;  %v2195_v62 = vadd.f32 %v2194_v37, %v4811_v35 }
 0x2c2   : > { %v2441_v38 = vmax.f32 %v2181_v46, 0.0  ;;  %2841 = vmatmul.bf16.vlgmr.msrb.gmra.mxu2 %v4689_v44 }
 0x2c3   : > { %v2244_v18 = vadd.f32 %v2243_v47, %v2195_v62 }
 0x2c4   : > { %v4815_v33 = vpack.c.bf16 %v2441_v38, %v2437_v58 }
 0x2c5   : > { %v2290_v19 = vpop.f32.mrf.mxu2 }
 0x2c6   : > { %v2339_v61 = vpop.f32.mrf.mxu3  ;;  %v2291_v6 = vadd.f32 %v2290_v19, %v2242_v56 }
 0x2c8   : > { %v2197_v59 = vpop.f32.mrf.mxu0  ;;  %v2340_v24 = vadd.f32 %v2339_v61, %v2291_v6 }
 0x2c9   : > { %v2246_v17 = vpop.f32.mrf.mxu1  ;;  %v2198_v16 = vadd.f32 %v2197_v59, %v4811_v35 }
 0x2ca   : > { %v2382_v9 = vmax.f32 %v2340_v24, 0.0 }
 0x2cb   : > { %2748 = vmatmul.bf16.gmra.mxu0 %v4531_v34  ;;  %v2247_v34 = vadd.f32 %v2246_v17, %v2198_v16 }
 0x2cc   : > { %2797 = vmatmul.bf16.gmra.mxu1 %v4598_v49 }
 0x2cd   : > { %v2292_v48 = vpop.f32.mrf.mxu2 }
 0x2ce   : > { %v2293_v44 = vadd.f32 %v2292_v48, %v2244_v18  ;;  %v2341_v5 = vpop.f32.mrf.mxu3 }
 0x2d0   : > { %v2342_v25 = vadd.f32 %v2341_v5, %v2293_v44  ;;  %v2199_v36 = vpop.f32.mrf.mxu0  ;;  %v4928_v44 = vld [vmem:[#allocation5_spill] sm:$0xff] }
 0x2d1   : > { %v2248_v10 = vpop.f32.mrf.mxu1  ;;  %v2200_v49 = vadd.f32 %v2199_v36, %v4811_v35 }
 0x2d2   : > { %v2386_v43 = vmax.f32 %v2342_v25, 0.0  ;;  %2846 = vmatmul.bf16.gmra.mxu2 %v4709_v26 }
 0x2d3   : > { %v2249_v23 = vadd.f32 %v2248_v10, %v2200_v49 }
 0x2d4   : > { %v2446_v53 = vpack.c.bf16 %v2386_v43, %v2382_v9 }
 0x2d5   : > { %v2295_v52 = vpop.f32.mrf.mxu2 }
 0x2d6   : > { %v2344_v1 = vpop.f32.mrf.mxu3  ;;  %2890 = vmatmul.bf16.vlgmr.msrb.gmra.mxu3 %v2446_v53  ;;  %v2296_v55 = vadd.f32 %v2295_v52, %v2247_v34 }
 0x2d8   : > { %v2202_v29 = vpop.f32.mrf.mxu0  ;;  %v2345_v32 = vadd.f32 %v2344_v1, %v2296_v55 }
 0x2d9   : > { %v2251_v30 = vpop.f32.mrf.mxu1  ;;  %v2203_v41 = vadd.f32 %v2202_v29, %v4811_v35 }
 0x2da   : > { %v2390_v8 = vmax.f32 %v2345_v32, 0.0  ;;  %v4929_v32 = vld [vmem:[#allocation6_spill] sm:$0xff] }
 0x2db   : > { %2753 = vmatmul.bf16.gmra.mxu0 %v4539_v42  ;;  %v2252_v42 = vadd.f32 %v2251_v30, %v2203_v41 }
 0x2dc   : > { %2802 = vmatmul.bf16.gmra.mxu1 %v4606_v39 }
 0x2dd   : > { %v2297_v31 = vpop.f32.mrf.mxu2 }
 0x2de   : > { %v2298_v26 = vadd.f32 %v2297_v31, %v2249_v23  ;;  %v2346_v57 = vpop.f32.mrf.mxu3 }
 0x2e0   : > { %v2347_v60 = vadd.f32 %v2346_v57, %v2298_v26  ;;  %v2204_v27 = vpop.f32.mrf.mxu0 }
 0x2e1   : > { %v2253_v63 = vpop.f32.mrf.mxu1  ;;  %v2205_v39 = vadd.f32 %v2204_v27, %v4811_v35 }
 0x2e2   : > { %v2394_v11 = vmax.f32 %v2347_v60, 0.0  ;;  %2851 = vmatmul.bf16.gmra.mxu2 %v4729_v12 }
 0x2e3   : > { %v2254_v46 = vadd.f32 %v2253_v63, %v2205_v39 }
 0x2e4   : > { %v2450_v22 = vpack.c.bf16 %v2394_v11, %v2390_v8 }
 0x2e5   : > { %v2300_v51 = vpop.f32.mrf.mxu2 }
 0x2e6   : > { %v2349_v28 = vpop.f32.mrf.mxu3  ;;  %2895 = vmatmul.bf16.gmra.mxu3 %v2450_v22  ;;  %v2301_v45 = vadd.f32 %v2300_v51, %v2252_v42 }
 0x2e8   : > { %v2207_v40 = vpop.f32.mrf.mxu0  ;;  %v2350_v47 = vadd.f32 %v2349_v28, %v2301_v45 }
 0x2e9   : > { %v2256_v15 = vpop.f32.mrf.mxu1  ;;  %v2208_v62 = vadd.f32 %v2207_v40, %v4811_v35 }
 0x2ea   : > { %v2398_v61 = vmax.f32 %v2350_v47, 0.0 }
 0x2eb   : > { %2758 = vmatmul.bf16.gmra.mxu0 %v4547_v50  ;;  %v2257_v50 = vadd.f32 %v2256_v15, %v2208_v62 }
 0x2ec   : > { %2807 = vmatmul.bf16.gmra.mxu1 %v4614_v20 }
 0x2ed   : > { %v2302_v37 = vpop.f32.mrf.mxu2 }
 0x2ee   : > { %v2303_v12 = vadd.f32 %v2302_v37, %v2254_v46  ;;  %v2351_v58 = vpop.f32.mrf.mxu3  ;;  %v4930_v37 = vld [vmem:[#allocation7_spill] sm:$0xff] }
 0x2f0   : > { %v2352_v38 = vadd.f32 %v2351_v58, %v2303_v12  ;;  %v2209_v0 = vpop.f32.mrf.mxu0 }
 0x2f1   : > { %v2258_v19 = vpop.f32.mrf.mxu1  ;;  %v2210_v20 = vadd.f32 %v2209_v0, %v4811_v35 }
 0x2f2   : > { %v2402_v56 = vmax.f32 %v2352_v38, 0.0  ;;  %2856 = vmatmul.bf16.gmra.mxu2 %v4749_v4 }
 0x2f3   : > { %v2259_v5 = vadd.f32 %v2258_v19, %v2210_v20 }
 0x2f4   : > { %v2454_v59 = vpack.c.bf16 %v2402_v56, %v2398_v61 }
 0x2f5   : > { %v2305_v17 = vpop.f32.mrf.mxu2 }
 0x2f6   : > { %v2354_v6 = vpop.f32.mrf.mxu3  ;;  %2900 = vmatmul.bf16.gmra.mxu3 %v2454_v59  ;;  %v2306_v24 = vadd.f32 %v2305_v17, %v2257_v50 }
 0x2f8   : > { %v2212_v18 = vpop.f32.mrf.mxu0  ;;  %v2355_v36 = vadd.f32 %v2354_v6, %v2306_v24 }
 0x2f9   : > { %v2261_v48 = vpop.f32.mrf.mxu1  ;;  %v2213_v1 = vadd.f32 %v2212_v18, %v4811_v35 }
 0x2fa   : > { %v2406_v53 = vmax.f32 %v2355_v36, 0.0 }
 0x2fb   : > { %2763 = vmatmul.bf16.gmra.mxu0 %v4928_v44  ;;  %v2262_v30 = vadd.f32 %v2261_v48, %v2213_v1  ;;  %v4931_v44 = vld [vmem:[#allocation8_spill] sm:$0xff] }
 0x2fc   : > { %2812 = vmatmul.bf16.gmra.mxu1 %v4622_v14 }
 0x2fd   : > { %v2307_v25 = vpop.f32.mrf.mxu2 }
 0x2fe   : > { %v2308_v4 = vadd.f32 %v2307_v25, %v2259_v5  ;;  %v2356_v10 = vpop.f32.mrf.mxu3 }
 0x300   : > { %v2357_v9 = vadd.f32 %v2356_v10, %v2308_v4  ;;  %v2214_v43 = vpop.f32.mrf.mxu0 }
 0x301   : > { %v2263_v16 = vpop.f32.mrf.mxu1  ;;  %v2215_v14 = vadd.f32 %v2214_v43, %v4811_v35 }
 0x302   : > { %v2410_v52 = vmax.f32 %v2357_v9, 0.0  ;;  %2861 = vmatmul.bf16.gmra.mxu2 %v4775_v54 }
 0x303   : > { %v2264_v26 = vadd.f32 %v2263_v16, %v2215_v14 }
 0x304   : > { %v2458_v34 = vpack.c.bf16 %v2410_v52, %v2406_v53 }
 0x305   : > { %v2310_v49 = vpop.f32.mrf.mxu2 }
 0x306   : > { %v2359_v29 = vpop.f32.mrf.mxu3  ;;  %2905 = vmatmul.bf16.gmra.mxu3 %v2458_v34  ;;  %v2311_v31 = vadd.f32 %v2310_v49, %v2262_v30 }
 0x308   : > { %v2217_v55 = vpop.f32.mrf.mxu0  ;;  %v2360_v60 = vadd.f32 %v2359_v29, %v2311_v31 }
 0x309   : > { %v2266_v23 = vpop.f32.mrf.mxu1  ;;  %v2218_v51 = vadd.f32 %v2217_v55, %v4811_v35 }
 0x30a   : > { %v2414_v41 = vmax.f32 %v2360_v60, 0.0 }
 0x30b   : > { %2768 = vmatmul.bf16.gmra.mxu0 %v4929_v32  ;;  %v2267_v40 = vadd.f32 %v2266_v23, %v2218_v51  ;;  %v4856_v51 = vld [vmem:[%s4922_s6] ss:$0 sm:$0xff] }
 0x30c   : > { %2817 = vmatmul.bf16.gmra.mxu1 %v4630_v13 }
 0x30d   : > { %v2312_v57 = vpop.f32.mrf.mxu2 }
 0x30e   : > { %v2313_v54 = vadd.f32 %v2312_v57, %v2264_v26  ;;  %v2361_v27 = vpop.f32.mrf.mxu3 }
 0x310   : > { %v2362_v63 = vadd.f32 %v2361_v27, %v2313_v54  ;;  %v2219_v8 = vpop.f32.mrf.mxu0 }
 0x311   : > { %v2268_v11 = vpop.f32.mrf.mxu1  ;;  %v2220_v13 = vadd.f32 %v2219_v8, %v4811_v35 }
 0x312   : > { %v2418_v22 = vmax.f32 %v2362_v63, 0.0  ;;  %2866 = vmatmul.bf16.gmra.mxu2 %v4795_v7 }
 0x313   : > { %v2269_v47 = vadd.f32 %v2268_v11, %v2220_v13 }
 0x314   : > { %v2462_v28 = vpack.c.bf16 %v2418_v22, %v2414_v41 }
 0x315   : > { %v2315_v42 = vpop.f32.mrf.mxu2 }
 0x316   : > { %v2364_v39 = vpop.f32.mrf.mxu3  ;;  %2910 = vmatmul.bf16.gmra.mxu3 %v2462_v28  ;;  %v2316_v46 = vadd.f32 %v2315_v42, %v2267_v40 }
 0x318   : > { %v2222_v15 = vpop.f32.mrf.mxu0  ;;  %v2365_v58 = vadd.f32 %v2364_v39, %v2316_v46 }
 0x319   : > { %v2271_v45 = vpop.f32.mrf.mxu1  ;;  %v2223_v59 = vadd.f32 %v2222_v15, %v4811_v35 }
 0x31a   : > { %v2422_v56 = vmax.f32 %v2365_v58, 0.0 }
 0x31b   : > { %2773 = vmatmul.bf16.gmra.mxu0 %v4930_v37  ;;  %v2272_v20 = vadd.f32 %v2271_v45, %v2223_v59 }
 0x31c   : > { %2822 = vmatmul.bf16.gmra.mxu1 %v4641_v3 }
 0x31d   : > { %v2317_v12 = vpop.f32.mrf.mxu2 }
 0x31e   : > { %v2318_v7 = vadd.f32 %v2317_v12, %v2269_v47  ;;  %v2366_v38 = vpop.f32.mrf.mxu3 }
 0x320   : > { %v2367_v0 = vadd.f32 %v2366_v38, %v2318_v7  ;;  %v2224_v19 = vpop.f32.mrf.mxu0 }
 0x321   : > { %v2273_v61 = vpop.f32.mrf.mxu1  ;;  %v2225_v3 = vadd.f32 %v2224_v19, %v4811_v35 }
 0x322   : > { %v2426_v62 = vmax.f32 %v2367_v0, 0.0  ;;  %2871 = vmatmul.bf16.gmra.mxu2 %v4806_v21 }
 0x323   : > { %v2274_v5 = vadd.f32 %v2273_v61, %v2225_v3 }
 0x324   : > { %v2466_v17 = vpack.c.bf16 %v2426_v62, %v2422_v56 }
 0x325   : > { %v2320_v6 = vpop.f32.mrf.mxu2 }
 0x326   : > { %v2369_v50 = vpop.f32.mrf.mxu3  ;;  %2915 = vmatmul.bf16.gmra.mxu3 %v2466_v17  ;;  %v2321_v24 = vadd.f32 %v2320_v6, %v2272_v20 }
 0x328   : > { %v2227_v18 = vpop.f32.mrf.mxu0  ;;  %v2370_v36 = vadd.f32 %v2369_v50, %v2321_v24 }
 0x329   : > { %v2276_v48 = vpop.f32.mrf.mxu1  ;;  %v2228_v52 = vadd.f32 %v2227_v18, %v4811_v35 }
 0x32a   : > { %v2430_v16 = vmax.f32 %v2370_v36, 0.0 }
 0x32b   : > { %2778 = vmatmul.bf16.gmra.mxu0 %v4931_v44  ;;  %v2277_v29 = vadd.f32 %v2276_v48, %v2228_v52 }
 0x32c   : > { %2827 = vmatmul.bf16.gmra.mxu1 %v4669_v2 }
 0x32d   : > { %v2322_v25 = vpop.f32.mrf.mxu2 }
 0x32e   : > { %v2323_v21 = vadd.f32 %v2322_v25, %v2274_v5  ;;  %v2371_v4 = vpop.f32.mrf.mxu3 }
 0x330   : > { %v2372_v10 = vadd.f32 %v2371_v4, %v2323_v21  ;;  %v2229_v9 = vpop.f32.mrf.mxu0 }
 0x331   : > { %v2278_v43 = vpop.f32.mrf.mxu1  ;;  %v2230_v2 = vadd.f32 %v2229_v9, %v4811_v35 }
 0x332   : > { %v2434_v53 = vmax.f32 %v2372_v10, 0.0  ;;  %2876 = vmatmul.bf16.gmra.mxu2 %v4815_v33 }
 0x333   : > { %v2279_v23 = vadd.f32 %v2278_v43, %v2230_v2 }
 0x334   : > { %v2470_v1 = vpack.c.bf16 %v2434_v53, %v2430_v16 }
 0x335   : > { %v2325_v34 = vpop.f32.mrf.mxu2 }
 0x336   : > { %v2374_v49 = vpop.f32.mrf.mxu3  ;;  %2920 = vmatmul.bf16.gmra.mxu3 %v2470_v1  ;;  %v2326_v55 = vadd.f32 %v2325_v34, %v2277_v29 }
 0x338   : > { %v2744_v30 = vpop.f32.mrf.mxu0  ;;  %v2375_v32 = vadd.f32 %v2374_v49, %v2326_v55 }
 0x339   : > { %v2793_v14 = vpop.f32.mrf.mxu1  ;;  %v2745_v42 = vadd.f32 %v4856_v51, %v2744_v30 }
 0x33a   : > { %v2438_v27 = vmax.f32 %v2375_v32, 0.0 }
 0x33b   : > { %v2794_v13 = vadd.f32 %v2793_v14, %v2745_v42 }
 0x33d   : > { %v2327_v31 = vpop.f32.mrf.mxu2 }
 0x33e   : > { %v2328_v26 = vadd.f32 %v2327_v31, %v2279_v23  ;;  %v2376_v57 = vpop.f32.mrf.mxu3 }
 0x340   : > { %v2377_v60 = vadd.f32 %v2376_v57, %v2328_v26  ;;  %v2746_v54 = vpop.f32.mrf.mxu0 }
 0x341   : > { %v2795_v33 = vpop.f32.mrf.mxu1  ;;  %v2747_v37 = vadd.f32 %v4856_v51, %v2746_v54 }
 0x342   : > { %v2442_v63 = vmax.f32 %v2377_v60, 0.0 }
 0x343   : > { %v2796_v58 = vadd.f32 %v2795_v33, %v2747_v37 }
 0x344   : > { %v2474_v8 = vpack.c.bf16 %v2442_v63, %v2438_v27 }
 0x345   : > { %v2842_v11 = vpop.f32.mrf.mxu2 }
 0x346   : > { %2925 = vmatmul.bf16.gmra.mxu3 %v2474_v8  ;;  %v2843_v15 = vadd.f32 %v2842_v11, %v2794_v13 }
 0x348   : > { %v2749_v41 = vpop.f32.mrf.mxu0 }
 0x349   : > { %v2798_v22 = vpop.f32.mrf.mxu1  ;;  %v2750_v19 = vadd.f32 %v4856_v51, %v2749_v41 }
 0x34b   : > { %v2799_v59 = vadd.f32 %v2798_v22, %v2750_v19 }
 0x34d   : > { %v2844_v35 = vpop.f32.mrf.mxu2 }
 0x34e   : > { %v2845_v38 = vadd.f32 %v2844_v35, %v2796_v58 }
 0x350   : > { %v2751_v28 = vpop.f32.mrf.mxu0 }
 0x351   : > { %v2800_v39 = vpop.f32.mrf.mxu1  ;;  %v2752_v20 = vadd.f32 %v4856_v51, %v2751_v28 }
 0x353   : > { %v2801_v24 = vadd.f32 %v2800_v39, %v2752_v20 }
 0x355   : > { %v2847_v40 = vpop.f32.mrf.mxu2 }
 0x356   : > { %v2848_v17 = vadd.f32 %v2847_v40, %v2799_v59 }
 0x358   : > { %v2754_v45 = vpop.f32.mrf.mxu0 }
 0x359   : > { %v2891_v46 = vpop.f32.mrf.mxu3  ;;  %v2803_v7 = vpop.f32.mrf.mxu1  ;;  %v2755_v25 = vadd.f32 %v4856_v51, %v2754_v45 }
 0x35a   : > { %v2892_v47 = vadd.f32 %v2891_v46, %v2843_v15 }
 0x35b   : > { %v2804_v10 = vadd.f32 %v2803_v7, %v2755_v25 }
 0x35c   : > { %2932 = vst.msk [vmem:[%s4864_s12] sm:$0xff] %vm2931_vm0, %v2892_v47 }
 0x35d   : > { %v2849_v12 = vpop.f32.mrf.mxu2 }
 0x35e   : > { %v2850_v44 = vadd.f32 %v2849_v12, %v2801_v24 }
 0x360   : > { %v2756_v56 = vpop.f32.mrf.mxu0 }
 0x361   : > { %v2893_v0 = vpop.f32.mrf.mxu3  ;;  %v2805_v6 = vpop.f32.mrf.mxu1  ;;  %v2757_v53 = vadd.f32 %v4856_v51, %v2756_v56 }
 0x362   : > { %v2894_v61 = vadd.f32 %v2893_v0, %v2845_v38 }
 0x363   : > { %v2806_v49 = vadd.f32 %v2805_v6, %v2757_v53 }
 0x364   : > { %2933 = vst.msk [vmem:[%s4864_s12 + $0x8] sm:$0xff] %vm2931_vm0, %v2894_v61 }
 0x365   : > { %v2852_v62 = vpop.f32.mrf.mxu2 }
 0x366   : > { %v2853_v43 = vadd.f32 %v2852_v62, %v2804_v10 }
 0x368   : > { %v2759_v18 = vpop.f32.mrf.mxu0 }
 0x369   : > { %v2896_v50 = vpop.f32.mrf.mxu3  ;;  %v2808_v36 = vpop.f32.mrf.mxu1  ;;  %v2760_v14 = vadd.f32 %v4856_v51, %v2759_v18 }
 0x36a   : > { %v2897_v3 = vadd.f32 %v2896_v50, %v2848_v17 }
 0x36b   : > { %v2809_v23 = vadd.f32 %v2808_v36, %v2760_v14 }
 0x36c   : > { %2934 = vst.msk [vmem:[%s4864_s12 + $0x10] sm:$0xff] %vm2931_vm0, %v2897_v3 }
 0x36d   : > { %v2854_v48 = vpop.f32.mrf.mxu2 }
 0x36e   : > { %v2855_v29 = vadd.f32 %v2854_v48, %v2806_v49 }
 0x370   : > { %v2761_v9 = vpop.f32.mrf.mxu0 }
 0x371   : > { %v2898_v5 = vpop.f32.mrf.mxu3  ;;  %v2810_v1 = vpop.f32.mrf.mxu1  ;;  %v2762_v60 = vadd.f32 %v4856_v51, %v2761_v9 }
 0x372   : > { %v2899_v21 = vadd.f32 %v2898_v5, %v2850_v44 }
 0x373   : > { %v2811_v27 = vadd.f32 %v2810_v1, %v2762_v60 }
 0x374   : > { %2935 = vst.msk [vmem:[%s4864_s12 + $0x18] sm:$0xff] %vm2931_vm0, %v2899_v21 }
 0x375   : > { %v2857_v4 = vpop.f32.mrf.mxu2 }
 0x376   : > { %v2858_v26 = vadd.f32 %v2857_v4, %v2809_v23 }
 0x378   : > { %v2764_v2 = vpop.f32.mrf.mxu0 }
 0x379   : > { %v2901_v16 = vpop.f32.mrf.mxu3  ;;  %v2813_v31 = vpop.f32.mrf.mxu1  ;;  %v2765_v22 = vadd.f32 %v4856_v51, %v2764_v2 }
 0x37a   : > { %v2902_v52 = vadd.f32 %v2901_v16, %v2853_v43 }
 0x37b   : > { %v2814_v42 = vadd.f32 %v2813_v31, %v2765_v22 }
 0x37c   : > { %2936 = vst.msk [vmem:[%s4864_s12 + $0x20] sm:$0xff] %vm2931_vm0, %v2902_v52 }
 0x37d   : > { %v2859_v34 = vpop.f32.mrf.mxu2 }
 0x37e   : > { %v2860_v63 = vadd.f32 %v2859_v34, %v2811_v27 }
 0x380   : > { %v2766_v33 = vpop.f32.mrf.mxu0 }
 0x381   : > { %v2903_v30 = vpop.f32.mrf.mxu3  ;;  %v2815_v8 = vpop.f32.mrf.mxu1  ;;  %v2767_v13 = vadd.f32 %v4856_v51, %v2766_v33 }
 0x382   : > { %v2904_v55 = vadd.f32 %v2903_v30, %v2855_v29 }
 0x383   : > { %v2816_v37 = vadd.f32 %v2815_v8, %v2767_v13 }
 0x384   : > { %2937 = vst.msk [vmem:[%s4864_s12 + $0x28] sm:$0xff] %vm2931_vm0, %v2904_v55 }
 0x385   : > { %v2862_v32 = vpop.f32.mrf.mxu2 }
 0x386   : > { %v2863_v39 = vadd.f32 %v2862_v32, %v2814_v42 }
 0x388   : > { %v2769_v28 = vpop.f32.mrf.mxu0 }
 0x389   : > { %v2906_v57 = vpop.f32.mrf.mxu3  ;;  %v2818_v15 = vpop.f32.mrf.mxu1  ;;  %v2770_v7 = vadd.f32 %v4856_v51, %v2769_v28 }
 0x38a   : > { %v2907_v54 = vadd.f32 %v2906_v57, %v2858_v26 }
 0x38b   : > { %v2819_v61 = vadd.f32 %v2818_v15, %v2770_v7 }
 0x38c   : > { %2938 = vst.msk [vmem:[%s4864_s12 + $0x30] sm:$0xff] %vm2931_vm0, %v2907_v54 }
 0x38d   : > { %v2864_v11 = vpop.f32.mrf.mxu2 }
 0x38e   : > { %v2865_v12 = vadd.f32 %v2864_v11, %v2816_v37 }
 0x390   : > { %v2771_v47 = vpop.f32.mrf.mxu0 }
 0x391   : > { %v2908_v41 = vpop.f32.mrf.mxu3  ;;  %v2820_v0 = vpop.f32.mrf.mxu1  ;;  %v2772_v17 = vadd.f32 %v4856_v51, %v2771_v47 }
 0x392   : > { %v2909_v35 = vadd.f32 %v2908_v41, %v2860_v63 }
 0x393   : > { %v2821_v50 = vadd.f32 %v2820_v0, %v2772_v17 }
 0x394   : > { %2939 = vst.msk [vmem:[%s4864_s12 + $0x38] sm:$0xff] %vm2931_vm0, %v2909_v35 }
 0x395   : > { %v2867_v46 = vpop.f32.mrf.mxu2 }
 0x396   : > { %v2868_v56 = vadd.f32 %v2867_v46, %v2819_v61 }
 0x398   : > { %v2774_v62 = vpop.f32.mrf.mxu0 }
 0x399   : > { %v2911_v40 = vpop.f32.mrf.mxu3  ;;  %v2823_v20 = vpop.f32.mrf.mxu1  ;;  %v2775_v24 = vadd.f32 %v4856_v51, %v2774_v62 }
 0x39a   : > { %v2912_v45 = vadd.f32 %v2911_v40, %v2863_v39 }
 0x39b   : > { %v2824_v25 = vadd.f32 %v2823_v20, %v2775_v24 }
 0x39c   : > { %2940 = vst.msk [vmem:[%s4864_s12 + $0x40] sm:$0xff] %vm2931_vm0, %v2912_v45 }
 0x39d   : > { %v2869_v19 = vpop.f32.mrf.mxu2 }
 0x39e   : > { %v2870_v18 = vadd.f32 %v2869_v19, %v2821_v50 }
 0x3a0   : > { %v2776_v5 = vpop.f32.mrf.mxu0 }
 0x3a1   : > { %v2913_v58 = vpop.f32.mrf.mxu3  ;;  %v2825_v36 = vpop.f32.mrf.mxu1  ;;  %v2777_v9 = vadd.f32 %v4856_v51, %v2776_v5 }
 0x3a2   : > { %v2914_v38 = vadd.f32 %v2913_v58, %v2865_v12 }
 0x3a3   : > { %v2826_v53 = vadd.f32 %v2825_v36, %v2777_v9 }
 0x3a4   : > { %2941 = vst.msk [vmem:[%s4864_s12 + $0x48] sm:$0xff] %vm2931_vm0, %v2914_v38 }
 0x3a5   : > { %v2872_v3 = vpop.f32.mrf.mxu2 }
 0x3a6   : > { %v2873_v21 = vadd.f32 %v2872_v3, %v2824_v25 }
 0x3a8   : > { %v2779_v16 = vpop.f32.mrf.mxu0 }
 0x3a9   : > { %v2916_v59 = vpop.f32.mrf.mxu3  ;;  %v2780_v34 = vadd.f32 %v4856_v51, %v2779_v16  ;;  %v2828_v29 = vpop.f32.mrf.mxu1 }
 0x3aa   : > { %v2917_v6 = vadd.f32 %v2916_v59, %v2868_v56 }
 0x3ab   : > { %v2829_v30 = vadd.f32 %v2828_v29, %v2780_v34 }
 0x3ac   : > { %2942 = vst.msk [vmem:[%s4864_s12 + $0x50] sm:$0xff] %vm2931_vm0, %v2917_v6 }
 0x3ad   : > { %v2874_v4 = vpop.f32.mrf.mxu2 }
 0x3ae   : > { %v2875_v52 = vadd.f32 %v2874_v4, %v2826_v53 }
 0x3b0   : > { %v2781_v14 = vpop.f32.mrf.mxu0 }
 0x3b1   : > { %v2918_v48 = vpop.f32.mrf.mxu3  ;;  %v2782_v31 = vadd.f32 %v4856_v51, %v2781_v14  ;;  %v2830_v26 = vpop.f32.mrf.mxu1 }
 0x3b2   : > { %v2919_v44 = vadd.f32 %v2918_v48, %v2870_v18 }
 0x3b3   : > { %v2831_v60 = vadd.f32 %v2830_v26, %v2782_v31 }
 0x3b4   : > { %2943 = vst.msk [vmem:[%s4864_s12 + $0x58] sm:$0xff] %vm2931_vm0, %v2919_v44 }
 0x3b5   : > { %v2877_v2 = vpop.f32.mrf.mxu2 }
 0x3b6   : > { %v2878_v55 = vadd.f32 %v2877_v2, %v2829_v30 }
 0x3b9   : > { %v2921_v10 = vpop.f32.mrf.mxu3 }
 0x3ba   : > { %v2922_v43 = vadd.f32 %v2921_v10, %v2873_v21 }
 0x3bc   : > { %2944 = vst.msk [vmem:[%s4864_s12 + $0x60] sm:$0xff] %vm2931_vm0, %v2922_v43 }
 0x3bd   : > { %v2879_v57 = vpop.f32.mrf.mxu2 }
 0x3be   : > { %v2880_v54 = vadd.f32 %v2879_v57, %v2831_v60 }
 0x3c1   : > { %v2923_v1 = vpop.f32.mrf.mxu3 }
 0x3c2   : > { %v2924_v49 = vadd.f32 %v2923_v1, %v2875_v52 }
 0x3c4   : > { %2945 = vst.msk [vmem:[%s4864_s12 + $0x68] sm:$0xff] %vm2931_vm0, %v2924_v49 }
 0x3c9   : > { %v2926_v23 = vpop.f32.mrf.mxu3 }
 0x3ca   : > { %v2927_v32 = vadd.f32 %v2926_v23, %v2878_v55 }
 0x3cc   : > { %2946 = vst.msk [vmem:[%s4864_s12 + $0x70] sm:$0xff] %vm2931_vm0, %v2927_v32 }
 0x3d1   : > { %v2928_v33 = vpop.f32.mrf.mxu3 }
 0x3d2   : > { %v2929_v27 = vadd.f32 %v2928_v33, %v2880_v54 }
 0x3d4   : > { %2947 = vst.msk [vmem:[%s4864_s12 + $0x78] sm:$0xff] %vm2931_vm0, %v2929_v27 }
 0x3d5 PF: > { %s18_s24 = sadd.s32 1, %s4052_s24  }
 0x3d6   : > { %p15_p7 = scmp.ge.s32.totalorder %s18_s24, 4  }
 0x3d8   :  { %17 = sbr.rel (!%p15_p7) target bundleno = 1 (0x1), region = 83 }
 0x3dd   :  { %2970 = vsyncpa [#allocation3], 1 }
 0x3de   :  { %2972 = vsyncpa [#allocation3 + $0x1], 1 }

</bundles_post_ra>
